<compile_context>
chip_gen: v7x
topology: tpu7x:2x2x1
jax: 0.10.0
libtpu: 0.0.40
codegen_flags: <defaults>
</compile_context>

<pallas_src>
import functools

import jax
import jax.numpy as jnp
from jax.experimental import pallas as pl
from jax.experimental.pallas import tpu as pltpu


H1, H2 = 800, 600          # logical hidden widths (PyTorch module)
H1P, H2P = 896, 640        # lane-padded hidden widths (multiples of 128)
LANE = 128                 # lane width for padding the action dim


def _actor_kernel(s_ref, w1_ref, b1_ref, w2_ref, b2_ref, w3_ref, b3_ref,
                  out_ref):
    bf16 = jnp.bfloat16
    # Layer 1: bf16 x bf16 -> f32 accumulate, +bias, ReLU.
    h1 = jnp.dot(s_ref[...].astype(bf16), w1_ref[...],
                 preferred_element_type=jnp.float32)
    h1 = jnp.maximum(h1 + b1_ref[...], 0.0)
    # Layer 2.
    h2 = jnp.dot(h1.astype(bf16), w2_ref[...],
                 preferred_element_type=jnp.float32)
    h2 = jnp.maximum(h2 + b2_ref[...], 0.0)
    # Layer 3 + tanh (EUP).
    a = jnp.dot(h2.astype(bf16), w3_ref[...],
                preferred_element_type=jnp.float32)
    out_ref[...] = jnp.tanh(a + b3_ref[...])


def prepare_actor_params(w1, b1, w2, b2, w3, b3):
    """One-time pad + bf16 quantization of the weights.

    Weights use (in_features, out_features) layout (transpose of nn.Linear's
    storage; numerically identical to F.linear with W = W_pt.T).  Call this
    ONCE (e.g. after loading a checkpoint), not per forward call.
    """
    S = w1.shape[0]
    A = w3.shape[1]
    AP = max(LANE, ((A + LANE - 1) // LANE) * LANE)   # lane-pad action dim
    f32, bf16 = jnp.float32, jnp.bfloat16

    w1p = jnp.zeros((S, H1P), bf16).at[:, :H1].set(w1.astype(bf16))
    b1p = jnp.zeros((1, H1P), f32).at[:, :H1].set(b1.astype(f32).reshape(1, H1))
    w2p = jnp.zeros((H1P, H2P), bf16).at[:H1, :H2].set(w2.astype(bf16))
    b2p = jnp.zeros((1, H2P), f32).at[:, :H2].set(b2.astype(f32).reshape(1, H2))
    w3p = jnp.zeros((H2P, AP), bf16).at[:H2, :A].set(w3.astype(bf16))
    b3p = jnp.zeros((1, AP), f32).at[:, :A].set(b3.astype(f32).reshape(1, A))
    return (w1p, b1p, w2p, b2p, w3p, b3p), A


@functools.partial(jax.jit, static_argnames=("action_dim",))
def actor_forward(s, padded_params, action_dim):
    """s: (B, state_dim) f32 -> (B, action_dim) f32.

    `padded_params` must come from `prepare_actor_params` (pre-padded bf16
    weights, f32 biases).  All tensors fit VMEM; single kernel invocation.
    """
    w1p, b1p, w2p, b2p, w3p, b3p = padded_params
    B, S = s.shape
    AP = w3p.shape[1]
    BP = max(8, ((B + 7) // 8) * 8)   # pad batch to a sublane multiple

    sp = jnp.zeros((BP, S), jnp.float32).at[:B].set(s.astype(jnp.float32))

    vmem = pl.BlockSpec(memory_space=pltpu.MemorySpace.VMEM)
    out = pl.pallas_call(
        _actor_kernel,
        out_shape=jax.ShapeDtypeStruct((BP, AP), jnp.float32),
        in_specs=[vmem] * 7,          # everything resident (~1.4 MB total)
        out_specs=vmem,
        compiler_params=pltpu.CompilerParams(
            vmem_limit_bytes=8 << 20,  # working set << 2 MiB
        ),
    )(sp, w1p, b1p, w2p, b2p, w3p, b3p)
    return out[:B, :action_dim]


def init_actor_params(key, state_dim, action_dim):
    """Deterministic PyTorch-Linear-style uniform init (U[-1/sqrt(fan_in), +])."""
    dims = [(state_dim, 800), (800, 600), (600, action_dim)]
    params = []
    for fan_in, fan_out in dims:
        kw, kb, key = jax.random.split(key, 3)
        bound = 1.0 / (fan_in ** 0.5)
        w = jax.random.uniform(kw, (fan_in, fan_out), jnp.float32, -bound, bound)
        b = jax.random.uniform(kb, (1, fan_out), jnp.float32, -bound, bound)
        params += [w, b]
    return params


def actor_ref(s, w1, b1, w2, b2, w3, b3):
    """Pure-JAX reference with the same bf16-in / f32-accumulate matmul path."""
    bf16, f32 = jnp.bfloat16, jnp.float32
    h1 = jax.nn.relu(jnp.dot(s.astype(bf16), w1.astype(bf16),
                             preferred_element_type=f32) + b1)
    h2 = jax.nn.relu(jnp.dot(h1.astype(bf16), w2.astype(bf16),
                             preferred_element_type=f32) + b2)
    return jnp.tanh(jnp.dot(h2.astype(bf16), w3.astype(bf16),
                            preferred_element_type=f32) + b3)


if __name__ == "__main__":
    key = jax.random.PRNGKey(0)
    k_in, k_par = jax.random.split(key)

    batch = 2
    state_dim = 24      # e.g. lidar bins + goal info (typical for this repo)
    action_dim = 2      # linear + angular velocity

    s = jax.random.normal(k_in, (batch, state_dim), jnp.float32)
    params = init_actor_params(k_par, state_dim, action_dim)

    # One-time weight prep (hoisted out of the per-call path).
    padded_params, A = prepare_actor_params(*params)
    padded_params = jax.block_until_ready(padded_params)

    out = actor_forward(s, padded_params, A)
    out = jax.block_until_ready(out)

    ref = actor_ref(s, *params)
    assert out.shape == (batch, action_dim)
    assert jnp.max(jnp.abs(out - ref)) < 1e-2, jnp.max(jnp.abs(out - ref))

    print("KERNEL_OK")
</pallas_src>

<mosaic_0001>
module attributes {stable_mosaic.version = 11 : i64} {
  func.func @_actor_kernel(%arg0: memref<8x24xf32, #tpu.memory_space<vmem>>, %arg1: memref<24x896xbf16, #tpu.memory_space<vmem>>, %arg2: memref<1x896xf32, #tpu.memory_space<vmem>>, %arg3: memref<896x640xbf16, #tpu.memory_space<vmem>>, %arg4: memref<1x640xf32, #tpu.memory_space<vmem>>, %arg5: memref<640x128xbf16, #tpu.memory_space<vmem>>, %arg6: memref<1x128xf32, #tpu.memory_space<vmem>>, %arg7: memref<8x128xf32, #tpu.memory_space<vmem>>) attributes {dimension_semantics = [], scalar_prefetch = 0 : i64, scratch_operands = 0 : i64, tpu.core_type = #tpu.core_type<tc>} {
    %c0 = arith.constant 0 : index
    %c0_0 = arith.constant 0 : index
    %0 = vector.load %arg0[%c0, %c0_0] : memref<8x24xf32, #tpu.memory_space<vmem>>, vector<8x24xf32>
    %1 = arith.truncf %0 : vector<8x24xf32> to vector<8x24xbf16>
    %c0_1 = arith.constant 0 : index
    %c0_2 = arith.constant 0 : index
    %2 = vector.load %arg1[%c0_1, %c0_2] : memref<24x896xbf16, #tpu.memory_space<vmem>>, vector<24x896xbf16>
    %cst = arith.constant dense<0.000000e+00> : vector<8x896xf32>
    %3 = tpu.matmul %1, %2, %cst {dimension_numbers = #tpu.dot_dimension_numbers<[1], [0], [0], [1], [0, 0, 1, 1], [], []>} : vector<8x24xbf16>, vector<24x896xbf16>, vector<8x896xf32> -> vector<8x896xf32>
    %c0_3 = arith.constant 0 : index
    %c0_4 = arith.constant 0 : index
    %4 = vector.load %arg2[%c0_3, %c0_4] : memref<1x896xf32, #tpu.memory_space<vmem>>, vector<1x896xf32>
    %5 = vector.broadcast %4 : vector<1x896xf32> to vector<8x896xf32>
    %6 = arith.addf %3, %5 : vector<8x896xf32>
    %cst_5 = arith.constant 0.000000e+00 : f32
    %7 = vector.broadcast %cst_5 : f32 to vector<8x896xf32>
    %8 = arith.maximumf %6, %7 : vector<8x896xf32>
    %9 = arith.truncf %8 : vector<8x896xf32> to vector<8x896xbf16>
    %c0_6 = arith.constant 0 : index
    %c0_7 = arith.constant 0 : index
    %10 = vector.load %arg3[%c0_6, %c0_7] : memref<896x640xbf16, #tpu.memory_space<vmem>>, vector<896x640xbf16>
    %cst_8 = arith.constant dense<0.000000e+00> : vector<8x640xf32>
    %11 = tpu.matmul %9, %10, %cst_8 {dimension_numbers = #tpu.dot_dimension_numbers<[1], [0], [0], [1], [0, 0, 1, 1], [], []>} : vector<8x896xbf16>, vector<896x640xbf16>, vector<8x640xf32> -> vector<8x640xf32>
    %c0_9 = arith.constant 0 : index
    %c0_10 = arith.constant 0 : index
    %12 = vector.load %arg4[%c0_9, %c0_10] : memref<1x640xf32, #tpu.memory_space<vmem>>, vector<1x640xf32>
    %13 = vector.broadcast %12 : vector<1x640xf32> to vector<8x640xf32>
    %14 = arith.addf %11, %13 : vector<8x640xf32>
    %cst_11 = arith.constant 0.000000e+00 : f32
    %15 = vector.broadcast %cst_11 : f32 to vector<8x640xf32>
    %16 = arith.maximumf %14, %15 : vector<8x640xf32>
    %17 = arith.truncf %16 : vector<8x640xf32> to vector<8x640xbf16>
    %c0_12 = arith.constant 0 : index
    %c0_13 = arith.constant 0 : index
    %18 = vector.load %arg5[%c0_12, %c0_13] : memref<640x128xbf16, #tpu.memory_space<vmem>>, vector<640x128xbf16>
    %cst_14 = arith.constant dense<0.000000e+00> : vector<8x128xf32>
    %19 = tpu.matmul %17, %18, %cst_14 {dimension_numbers = #tpu.dot_dimension_numbers<[1], [0], [0], [1], [0, 0, 1, 1], [], []>} : vector<8x640xbf16>, vector<640x128xbf16>, vector<8x128xf32> -> vector<8x128xf32>
    %c0_15 = arith.constant 0 : index
    %c0_16 = arith.constant 0 : index
    %20 = vector.load %arg6[%c0_15, %c0_16] : memref<1x128xf32, #tpu.memory_space<vmem>>, vector<1x128xf32>
    %21 = vector.broadcast %20 : vector<1x128xf32> to vector<8x128xf32>
    %22 = arith.addf %19, %21 : vector<8x128xf32>
    %23 = math.tanh %22 : vector<8x128xf32>
    %c0_17 = arith.constant 0 : index
    %c0_18 = arith.constant 0 : index
    %24 = vector.load %arg7[%c0_17, %c0_18] : memref<8x128xf32, #tpu.memory_space<vmem>>, vector<8x128xf32>
    tpu.vector_store %arg7[%c0_17, %c0_18], %23 {strides = array<i32>} : memref<8x128xf32, #tpu.memory_space<vmem>>, vector<8x128xf32>,
    return
  }
}

</mosaic_0001>

<bundles_post_ra>
// kernel: actor_forward.1
= control target key start
LH: loop header
LB: loop body
LE: loop exit
PB: predicated region body
PF: predicated region fallthrough
CT: control target
= control target key end

     0   :  { %12 = vsyncpa [#allocation3], 0  ;;  %s4604_s0 = inlined_call_operand.vmem [shape: f32[8,24], index: 0, kind: input, shape index: {}]   ;;  %s4605_s1 = inlined_call_operand.hbm [shape: bf16[24,896], index: 1, kind: input, shape index: {}]   ;;  %s4606_s2 = inlined_call_operand.hbm [shape: f32[1,896], index: 2, kind: input, shape index: {}]   ;;  %s4607_s3 = inlined_call_operand.hbm [shape: bf16[896,640], index: 3, kind: input, shape index: {}]   ;;  %s4608_s4 = inlined_call_operand.hbm [shape: f32[1,640], index: 4, kind: input, shape index: {}]   ;;  %s4609_s5 = inlined_call_operand.hbm [shape: bf16[640,128], index: 5, kind: input, shape index: {}]   ;;  %s4610_s6 = inlined_call_operand.hbm [shape: f32[1,128], index: 6, kind: input, shape index: {}]   ;;  %s4611_s7 = inlined_call_operand.vmem [shape: f32[8,128], index: 7, kind: output, shape index: {}]  }
   0x1   :  { %13 = vsyncpa [#allocation5], 0 }
   0x2   :  { %14 = vsyncpa [#allocation8], 0 }
   0x3   :  { %15 = vsyncpa [#allocation11], 0  ;;  %s4340_s24 = smov [#allocation4]   ;;  %s4341_s26 = smov [#allocation7]  }
   0x4   :  { %s36_s25 = sshll.u32 %s4340_s24, 4  ;;  %s58_s27 = sshll.u32 %s4341_s26, 4  ;;  %s37_s25 = int_to_ptr.vmem [resolvable:$true] %s36_s25  ;;  %s59_s27 = int_to_ptr.vmem [resolvable:$true] %s58_s27 }
   0x5   :  { %s4200_s30 = scalar_lea.hbm %s4606_s2, 112 }
   0x6   :  { %p4201_p0 = scmp.ne.s32.totalorder %s4606_s2, %s4200_s30  ;;  %p4204_p1 = scmp.lt.u32.totalorder %s4200_s30, %s4606_s2 }
   0x8   :  { %p4206_p2 = pnand %p4204_p1, %p4201_p0 }
   0xa   :  { %4209 = shalt.err (!%p4206_p2)
}
   0xb   :  { %s4210_s12 = scalar_lea.vmem %s37_s25, 112  ;;  %s4214_s13 = scalar_lea.vmem %s37_s25, 128 }
   0xc   :  { %p4211_p3 = scmp.ne.s32.totalorder %s37_s25, %s4210_s12  ;;  %p4215_p4 = scmp.lt.s32.totalorder %s37_s25, %s37_s25 }
   0xd   :  { %p4216_p5 = scmp.lt.s32.totalorder %s4214_s13, %s4210_s12 }
   0xf   :  { %p4217_p6 = por %p4216_p5, %p4215_p4 }
  0x11   :  { %p4218_p7 = pnand %p4217_p6, %p4211_p3 }
  0x13   :  { %4221 = shalt.err (!%p4218_p7)
}
  0x14   :  { %39 = dma.hbm_to_vmem [thread:$0]  %s4606_s2, 112, %s37_s25, [#allocation5]  }
  0x15   :  { %s4222_s18 = scalar_lea.hbm %s4608_s4, 80 }
  0x16   :  { %p4223_p8 = scmp.ne.s32.totalorder %s4608_s4, %s4222_s18  ;;  %p4226_p9 = scmp.lt.u32.totalorder %s4222_s18, %s4608_s4 }
  0x18   :  { %p4228_p10 = pnand %p4226_p9, %p4223_p8 }
  0x1a   :  { %4231 = shalt.err (!%p4228_p10)
}
  0x1b   :  { %s4232_s23 = scalar_lea.vmem %s59_s27, 80  ;;  %s4236_s24 = scalar_lea.vmem %s59_s27, 96 }
  0x1c   :  { %p4233_p11 = scmp.ne.s32.totalorder %s59_s27, %s4232_s23  ;;  %p4237_p12 = scmp.lt.s32.totalorder %s59_s27, %s59_s27 }
  0x1d   :  { %p4238_p13 = scmp.lt.s32.totalorder %s4236_s24, %s4232_s23 }
  0x1f   :  { %p4239_p0 = por %p4238_p13, %p4237_p12 }
  0x21   :  { %p4240_p1 = pnand %p4239_p0, %p4233_p11 }
  0x23   :  { %4243 = shalt.err (!%p4240_p1)
}
  0x24   :  { %61 = dma.hbm_to_vmem [thread:$0]  %s4608_s4, 80, %s59_s27, [#allocation8]  }
  0x25   :  { %s4342_s26 = smov [#allocation2]   ;;  %s4244_s8 = scalar_lea.hbm %s4605_s1, 1344 }
  0x26   :  { %s23_s28 = sshll.u32 %s4342_s26, 4  ;;  %p4245_p2 = scmp.ne.s32.totalorder %s4605_s1, %s4244_s8  ;;  %s24_s28 = int_to_ptr.vmem [resolvable:$true] %s23_s28 }
  0x27   :  { %p4248_p3 = scmp.lt.u32.totalorder %s4244_s8, %s4605_s1 }
  0x29   :  { %p4250_p4 = pnand %p4248_p3, %p4245_p2 }
  0x2b   :  { %4253 = shalt.err (!%p4250_p4)
}
  0x2c   :  { %s4254_s13 = scalar_lea.vmem %s24_s28, 1344  ;;  %p4259_p6 = scmp.lt.s32.totalorder %s24_s28, %s24_s28 }
  0x2d   :  { %p4255_p5 = scmp.ne.s32.totalorder %s24_s28, %s4254_s13  ;;  %p4260_p7 = scmp.lt.s32.totalorder %s4254_s13, %s4254_s13 }
  0x2f   :  { %p4261_p8 = por %p4260_p7, %p4259_p6 }
  0x31   :  { %p4262_p9 = pnand %p4261_p8, %p4255_p5 }
  0x33   :  { %4265 = shalt.err (!%p4262_p9)
}
  0x34   :  { %s4343_s4 = smov 448   ;;  %s4344_s27 = smov 28  }
  0x35   :  { %29 = dma.hbm_to_vmem [thread:$0]  %s4605_s1, 1344, %s24_s28, [#allocation3], %s4343_s4, %s4343_s4, %s4344_s27  }
  0x36   :  { %s4345_s16 = smov [#allocation6]   ;;  %s4266_s20 = scalar_lea.hbm %s4607_s3, 35840 }
  0x37   :  { %s45_s17 = sshll.u32 %s4345_s16, 4  ;;  %p4267_p10 = scmp.ne.s32.totalorder %s4607_s3, %s4266_s20  ;;  %s46_s17 = int_to_ptr.vmem [resolvable:$true] %s45_s17 }
  0x38   :  { %p4270_p11 = scmp.lt.u32.totalorder %s4266_s20, %s4607_s3 }
  0x3a   :  { %p4272_p12 = pnand %p4270_p11, %p4267_p10 }
  0x3c   :  { %4275 = shalt.err (!%p4272_p12)
}
  0x3d   :  { %s4276_s2 = scalar_lea.vmem %s46_s17, 35840  ;;  %p4281_p0 = scmp.lt.s32.totalorder %s46_s17, %s46_s17 }
  0x3e   :  { %p4277_p13 = scmp.ne.s32.totalorder %s46_s17, %s4276_s2  ;;  %p4282_p1 = scmp.lt.s32.totalorder %s4276_s2, %s4276_s2 }
  0x40   :  { %p4283_p2 = por %p4282_p1, %p4281_p0 }
  0x42   :  { %p4284_p3 = pnand %p4283_p2, %p4277_p13 }
  0x44   :  { %4287 = shalt.err (!%p4284_p3)
}
  0x45   :  { %s4346_s1 = smov 320   ;;  %s4347_s25 = smov 20  }
  0x46   :  { %51 = dma.hbm_to_vmem [thread:$0]  %s4607_s3, 35840, %s46_s17, [#allocation5], %s4346_s1, %s4346_s1, %s4347_s25  }
  0x47   :  { %s4348_s29 = smov [#allocation9]   ;;  %s4288_s10 = scalar_lea.hbm %s4609_s5, 5120 }
  0x48   :  { %s67_s30 = sshll.u32 %s4348_s29, 4  ;;  %p4289_p4 = scmp.ne.s32.totalorder %s4609_s5, %s4288_s10  ;;  %s68_s30 = int_to_ptr.vmem [resolvable:$true] %s67_s30 }
  0x49   :  { %p4292_p5 = scmp.lt.u32.totalorder %s4288_s10, %s4609_s5 }
  0x4b   :  { %p4294_p6 = pnand %p4292_p5, %p4289_p4 }
  0x4d   :  { %4297 = shalt.err (!%p4294_p6)
}
  0x4e   :  { %s4298_s27 = scalar_lea.vmem %s68_s30, 5120  ;;  %p4303_p8 = scmp.lt.s32.totalorder %s68_s30, %s68_s30 }
  0x4f   :  { %p4299_p7 = scmp.ne.s32.totalorder %s68_s30, %s4298_s27  ;;  %p4304_p9 = scmp.lt.s32.totalorder %s4298_s27, %s4298_s27 }
  0x51   :  { %p4305_p10 = por %p4304_p9, %p4303_p8 }
  0x53   :  { %p4306_p11 = pnand %p4305_p10, %p4299_p7 }
  0x55   :  { %4309 = shalt.err (!%p4306_p11)
}
  0x56   :  { %s4349_s3 = smov 64   ;;  %s4350_s14 = smov 4  }
  0x57   :  { %73 = dma.hbm_to_vmem [thread:$0]  %s4609_s5, 5120, %s68_s30, [#allocation8], %s4349_s3, %s4349_s3, %s4350_s14  }
  0x58   :  { %s4351_s17 = smov [#allocation10]   ;;  %s4310_s21 = scalar_lea.hbm %s4610_s6, 16 }
  0x59   :  { %s80_s18 = sshll.u32 %s4351_s17, 4  ;;  %p4311_p12 = scmp.ne.s32.totalorder %s4610_s6, %s4310_s21  ;;  %s81_s18 = int_to_ptr.vmem [resolvable:$true] %s80_s18 }
  0x5a   :  { %p4314_p13 = scmp.lt.u32.totalorder %s4310_s21, %s4610_s6 }
  0x5c   :  { %p4316_p0 = pnand %p4314_p13, %p4311_p12 }
  0x5e   :  { %4319 = shalt.err (!%p4316_p0)
}
  0x5f   :  { %s4320_s1 = scalar_lea.vmem %s81_s18, 16  ;;  %s4324_s5 = scalar_lea.vmem %s81_s18, 32 }
  0x60   :  { %p4321_p1 = scmp.ne.s32.totalorder %s81_s18, %s4320_s1  ;;  %p4325_p2 = scmp.lt.s32.totalorder %s81_s18, %s81_s18 }
  0x61   :  { %p4326_p3 = scmp.lt.s32.totalorder %s4324_s5, %s4320_s1 }
  0x63   :  { %p4327_p4 = por %p4326_p3, %p4325_p2 }
  0x65   :  { %p4328_p5 = pnand %p4327_p4, %p4321_p1 }
  0x67   :  { %4331 = shalt.err (!%p4328_p5)
}
  0x68   :  { %83 = dma.hbm_to_vmem [thread:$0]  %s4610_s6, 16, %s81_s18, [#allocation11]  }
  0x69   :  { %4332 = dma.done.wait [#allocation3], 1344  }
  0x6a   :  { %4333 = vsyncadd [#allocation3], 4294965952 }
  0x6b   :  { %4334 = dma.done.wait [#allocation5], 35952  }
  0x6c   :  { %4335 = vsyncadd [#allocation5], 4294931344 }
  0x6d   :  { %4336 = dma.done.wait [#allocation8], 5200  }
  0x6e   :  { %4337 = vsyncadd [#allocation8], 4294962096 }
  0x6f   :  { %4338 = dma.done.wait [#allocation11], 16  }
  0x70   :  { %4339 = vsyncadd [#allocation11], 4294967280  ;;  %v4352_v0 = vmov 0   ;;  %v3749_v1 = vld [vmem:[#allocation2 + $0x4] ss:$28 sps:$4 sm:$0xff]   ;;  %v113_v3 = vld [vmem:[#allocation2 + $0x38] sm:$0xff] }
  0x71   :  { %266 = vmatprep.mubr.bf16.mxu1 %v4352_v0  ;;  %v3751_v2 = vld [vmem:[#allocation2] ss:$28 sps:$4 sm:$0xff]   ;;  %vm212_vm0 = vcmask 1043456   ;;  %234 = vmatprep.subr.bf16.mxu1 %v3749_v1  ;;  %v3193_v4 = vcombine.high %v113_v3, %v113_v3  ;;  %v3192_v5 = vcombine.low %v113_v3, %v113_v3  ;;  %v3756_v8 = vld [vmem:[#allocation2 + $0xc] ss:$28 sps:$4 sm:$0xff]   ;;  %vm208_vm1 = vcmask 195584  }
  0x72   :  { %235 = vmatpush1.bf16.msra.mxu1 %v3751_v2  ;;  %v103_v6 = vld [vmem:[%s4604_s0] sm:$0xff]  ;;  %v3771_v15 = vld [vmem:[#allocation6] ss:$20 sps:$4 sm:$0xff]   ;;  %v115_v18 = vld [vmem:[#allocation2 + $0x48] sm:$0xff]  ;;  %v4353_v32 = vmov 0.0   ;;  %vm4354_vm2 = vmmov 0  }
  0x73   :  { %3199 = vmatprep.subr.msk.bf16.mxu1 %vm212_vm0, %v3193_v4  ;;  %v214_v7 = vsel %vm212_vm0, %v3192_v5, 0  ;;  %v114_v9 = vld [vmem:[#allocation2 + $0x40] sm:$0xff]  ;;  %v4473_v10 = vpack.c.bf16 %v103_v6, %v103_v6  ;;  %v3772_v16 = vld [vmem:[#allocation6 + $0x2c] ss:$20 sps:$4 sm:$0xff]   ;;  %v3761_v17 = vld [vmem:[#allocation2 + $0x14] ss:$28 sps:$4 sm:$0xff]   ;;  %v3197_v23 = vcombine.high %v115_v18, %v115_v18  ;;  %v3196_v24 = vcombine.low %v115_v18, %v115_v18 }
  0x74   :  { %v3754_v11 = vld [vmem:[#allocation2 + $0x8] ss:$28 sps:$4 sm:$0xff]   ;;  %v3766_v12 = vld [vmem:[#allocation6 + $0x4] ss:$20 sps:$4 sm:$0xff]   ;;  %v3195_v13 = vcombine.high %v114_v9, %v114_v9  ;;  %v3194_v14 = vcombine.low %v114_v9, %v114_v9  ;;  %v3759_v22 = vld [vmem:[#allocation2 + $0x10] ss:$28 sps:$4 sm:$0xff]  }
  0x75   :  { %2230 = vmatprep.subr.bf16.mxu0 %v3766_v12  ;;  %v3777_v20 = vld [vmem:[#allocation6 + $0x28] ss:$20 sps:$4 sm:$0xff]   ;;  %v3783_v25 = vld [vmem:[#allocation6 + $0x50] ss:$20 sps:$4 sm:$0xff]   ;;  %v226_v27 = vsel %vm212_vm0, %v3196_v24, 0 }
  0x76   :  { %237 = vmatpush1.bf16.msra.mxu1 %v214_v7  ;;  %v220_v19 = vsel %vm212_vm0, %v3194_v14, 0  ;;  %2231 = vmatpush1.bf16.msra.mxu0 %v3771_v15  ;;  %v3778_v21 = vld [vmem:[#allocation6 + $0x54] ss:$20 sps:$4 sm:$0xff]   ;;  %v3784_v26 = vld [vmem:[#allocation6 + $0x7c] ss:$20 sps:$4 sm:$0xff]  }
  0x77   :  { %275 = vmatprep.subr.bf16.mxu1 %v3756_v8  ;;  %2232 = vmatprep.subr.bf16.mxu0 %v3772_v16  ;;  %v3789_v28 = vld [vmem:[#allocation6 + $0x78] ss:$20 sps:$4 sm:$0xff]   ;;  %v3765_v31 = vld [vmem:[#allocation2 + $0x50] ss:$0 sps:$4 sm:$0xff]   ;;  %v3801_v37 = vld [vmem:[#allocation6 + $0xc8] ss:$20 sps:$4 sm:$0xff]  }
  0x78   :  { %v3790_v29 = vld [vmem:[#allocation6 + $0xa4] ss:$20 sps:$4 sm:$0xff]   ;;  %v3795_v33 = vld [vmem:[#allocation6 + $0xa0] ss:$20 sps:$4 sm:$0xff]   ;;  %v232_v36 = vsel %vm212_vm0, %v3765_v31, 0 }
  0x79   :  { %3200 = vmatmul.mubr.msk.bf16.vlgmr.msra.gmra.mrb[0].mxu1 %vm208_vm1, %v4473_v10  ;;  %v3764_v30 = vld [vmem:[#allocation2 + $0x18] ss:$28 sps:$4 sm:$0xff]   ;;  %v3796_v34 = vld [vmem:[#allocation6 + $0xcc] ss:$20 sps:$4 sm:$0xff]   ;;  %v3802_v38 = vld [vmem:[#allocation6 + $0xf4] ss:$20 sps:$4 sm:$0xff]  }
  0x7a   :  { %276 = vmatpush1.bf16.msra.mxu1 %v3754_v11  ;;  %307 = vmatprep.mubr.bf16.mxu1 %v4352_v0  ;;  %v3770_v35 = vld [vmem:[#allocation6 + $0xc] ss:$20 sps:$4 sm:$0xff]   ;;  %v3768_v39 = vld [vmem:[#allocation6 + $0x8] ss:$20 sps:$4 sm:$0xff]   ;;  %v3807_v41 = vld [vmem:[#allocation6 + $0xf0] ss:$20 sps:$4 sm:$0xff]  }
  0x7b   :  { %3201 = vmatprep.subr.msk.bf16.mxu1 %vm212_vm0, %v3195_v13  ;;  %2233 = vmatpush1.bf16.msra.mxu0 %v3777_v20  ;;  %v3776_v40 = vld [vmem:[#allocation6 + $0x34] ss:$20 sps:$4 sm:$0xff]   ;;  %v3808_v42 = vld [vmem:[#allocation6 + $0x11c] ss:$20 sps:$4 sm:$0xff]   ;;  %v3813_v45 = vld [vmem:[#allocation6 + $0x118] ss:$20 sps:$4 sm:$0xff]  }
  0x7c   :  { %2234 = vmatprep.subr.bf16.mxu0 %v3778_v21  ;;  %v3774_v43 = vld [vmem:[#allocation6 + $0x30] ss:$20 sps:$4 sm:$0xff]   ;;  %v3780_v47 = vld [vmem:[#allocation6 + $0x58] ss:$20 sps:$4 sm:$0xff]   ;;  %v3819_v49 = vld [vmem:[#allocation6 + $0x140] ss:$20 sps:$4 sm:$0xff]  }
  0x7d   :  { %v3782_v44 = vld [vmem:[#allocation6 + $0x5c] ss:$20 sps:$4 sm:$0xff]   ;;  %v3814_v46 = vld [vmem:[#allocation6 + $0x144] ss:$20 sps:$4 sm:$0xff]   ;;  %v3820_v50 = vld [vmem:[#allocation6 + $0x16c] ss:$20 sps:$4 sm:$0xff]  }
  0x7e   :  { %278 = vmatpush1.bf16.msra.mxu1 %v220_v19  ;;  %v3788_v48 = vld [vmem:[#allocation6 + $0x84] ss:$20 sps:$4 sm:$0xff]   ;;  %v3786_v51 = vld [vmem:[#allocation6 + $0x80] ss:$20 sps:$4 sm:$0xff]   ;;  %v3825_v53 = vld [vmem:[#allocation6 + $0x168] ss:$20 sps:$4 sm:$0xff]  }
  0x7f   :  { %316 = vmatprep.subr.bf16.mxu1 %v3761_v17  ;;  %2235 = vmatpush1.bf16.msra.mxu0 %v3783_v25  ;;  %v3794_v52 = vld [vmem:[#allocation6 + $0xac] ss:$20 sps:$4 sm:$0xff]   ;;  %v3826_v54 = vld [vmem:[#allocation6 + $0x194] ss:$20 sps:$4 sm:$0xff]   ;;  %v3831_v57 = vld [vmem:[#allocation6 + $0x190] ss:$20 sps:$4 sm:$0xff]  }
  0x80   :  { %2236 = vmatprep.subr.bf16.mxu0 %v3784_v26  ;;  %v3792_v55 = vld [vmem:[#allocation6 + $0xa8] ss:$20 sps:$4 sm:$0xff]   ;;  %v3798_v59 = vld [vmem:[#allocation6 + $0xd0] ss:$20 sps:$4 sm:$0xff]   ;;  %v3837_v61 = vld [vmem:[#allocation6 + $0x1b8] ss:$20 sps:$4 sm:$0xff]  }
  0x81   :  { %3202 = vmatmul.mubr.msk.bf16.vlgmr.msra.gmra.mrb[4].mxu1 %vm208_vm1, %v4473_v10  ;;  %v3800_v56 = vld [vmem:[#allocation6 + $0xd4] ss:$20 sps:$4 sm:$0xff]   ;;  %v3832_v58 = vld [vmem:[#allocation6 + $0x1bc] ss:$20 sps:$4 sm:$0xff]   ;;  %v3838_v62 = vld [vmem:[#allocation6 + $0x1e4] ss:$20 sps:$4 sm:$0xff]  }
  0x82   :  { %317 = vmatpush1.bf16.msra.mxu1 %v3759_v22  ;;  %348 = vmatprep.mubr.bf16.mxu1 %v4352_v0  ;;  %v3806_v60 = vld [vmem:[#allocation6 + $0xfc] ss:$20 sps:$4 sm:$0xff]   ;;  %v3804_v63 = vld [vmem:[#allocation6 + $0xf8] ss:$20 sps:$4 sm:$0xff]   ;;  %v3843_v2 = vld [vmem:[#allocation6 + $0x1e0] ss:$20 sps:$4 sm:$0xff]  }
  0x83   :  { %3203 = vmatprep.subr.msk.bf16.mxu1 %vm212_vm0, %v3197_v23  ;;  %2237 = vmatpush1.bf16.msra.mxu0 %v3789_v28  ;;  %v3812_v1 = vld [vmem:[#allocation6 + $0x124] ss:$20 sps:$4 sm:$0xff]   ;;  %v3844_v3 = vld [vmem:[#allocation6 + $0x20c] ss:$20 sps:$4 sm:$0xff]   ;;  %v3849_v6 = vld [vmem:[#allocation6 + $0x208] ss:$20 sps:$4 sm:$0xff]   ;;  %v119_v28 = vlaneseq }
  0x84   :  { %2238 = vmatprep.subr.bf16.mxu0 %v3790_v29  ;;  %v3810_v4 = vld [vmem:[#allocation6 + $0x120] ss:$20 sps:$4 sm:$0xff]   ;;  %v3816_v7 = vld [vmem:[#allocation6 + $0x148] ss:$20 sps:$4 sm:$0xff]   ;;  %v3822_v9 = vld [vmem:[#allocation6 + $0x170] ss:$20 sps:$4 sm:$0xff]  }
  0x85   :  { %v3818_v5 = vld [vmem:[#allocation6 + $0x14c] ss:$20 sps:$4 sm:$0xff]   ;;  %v3824_v8 = vld [vmem:[#allocation6 + $0x174] ss:$20 sps:$4 sm:$0xff]   ;;  %v3836_v12 = vld [vmem:[#allocation6 + $0x1c4] ss:$20 sps:$4 sm:$0xff]  }
  0x86   :  { %319 = vmatpush1.bf16.msra.mxu1 %v226_v27  ;;  %v3828_v11 = vld [vmem:[#allocation6 + $0x198] ss:$20 sps:$4 sm:$0xff]   ;;  %v3834_v13 = vld [vmem:[#allocation6 + $0x1c0] ss:$20 sps:$4 sm:$0xff]   ;;  %v3840_v15 = vld [vmem:[#allocation6 + $0x1e8] ss:$20 sps:$4 sm:$0xff]  }
  0x87   :  { %3658 = vmatprep.subr.bf16.mxu1 %v4353_v32  ;;  %2239 = vmatpush1.bf16.msra.mxu0 %v3795_v33  ;;  %v3842_v14 = vld [vmem:[#allocation6 + $0x1ec] ss:$20 sps:$4 sm:$0xff]   ;;  %v3848_v16 = vld [vmem:[#allocation6 + $0x214] ss:$20 sps:$4 sm:$0xff]   ;;  %v3846_v17 = vld [vmem:[#allocation6 + $0x210] ss:$20 sps:$4 sm:$0xff]  }
  0x88   :  { %2240 = vmatprep.subr.bf16.mxu0 %v3796_v34  ;;  %v3850_v18 = vld [vmem:[#allocation6 + $0x234] ss:$20 sps:$4 sm:$0xff]   ;;  %v3854_v19 = vld [vmem:[#allocation6 + $0x23c] ss:$20 sps:$4 sm:$0xff]   ;;  %v3852_v20 = vld [vmem:[#allocation6 + $0x238] ss:$20 sps:$4 sm:$0xff]  }
  0x89   :  { %3204 = vmatmul.mubr.msk.bf16.vlgmr.msra.gmra.mrb[8].mxu1 %vm208_vm1, %v4473_v10  ;;  %v3855_v21 = vld [vmem:[#allocation6 + $0x230] ss:$20 sps:$4 sm:$0xff]   ;;  %v3858_v24 = vld [vmem:[#allocation6 + $0x260] ss:$20 sps:$4 sm:$0xff]   ;;  %v3861_v25 = vld [vmem:[#allocation6 + $0x258] ss:$20 sps:$4 sm:$0xff]  }
  0x8a   :  { %3659 = vmatpush3.bf16.msra.mxu1 %v3764_v30  ;;  %3662 = vmatprep.mubr.msk.bf16.mxu1 %vm4354_vm2, %v4353_v32  ;;  %v3856_v22 = vld [vmem:[#allocation6 + $0x25c] ss:$20 sps:$4 sm:$0xff]   ;;  %v3860_v23 = vld [vmem:[#allocation6 + $0x264] ss:$20 sps:$4 sm:$0xff]   ;;  %v3867_v27 = vld [vmem:[#allocation6 + $0x28c] ss:$20 sps:$4 sm:$0xff]  }
  0x8b   :  { %3660 = vmatprep.subr.bf16.mxu1 %v4353_v32  ;;  %2241 = vmatpush1.bf16.msra.mxu0 %v3801_v37  ;;  %v3864_v26 = vld [vmem:[#allocation6 + $0x284] ss:$20 sps:$4 sm:$0xff]   ;;  %v4494_v29 = vshrl.u32 %v119_v28, 7 }
  0x8c   :  { %2242 = vmatprep.subr.bf16.mxu0 %v3802_v38  ;;  %v4497_v31 = vld [vmem:[#allocation4] sm:$0xff] }
  0x8d   :  { %v121_v30 = vsub.s32 0, %v4494_v29  ;;  %v125_v33 = vsub.s32 1, %v4494_v29  ;;  %v3904_v28 = vld [vmem:[#allocation6 + $0x398] ss:$20 sps:$4 sm:$0xff]  }
  0x8e   :  { %3661 = vmatpush3.bf16.msra.mxu1 %v232_v36 }
  0x8f   :  { %2394 = vmatprep.subr.bf16.mxu1 %v3770_v35  ;;  %2243 = vmatpush1.bf16.msra.mxu0 %v3807_v41  ;;  %v122_v34 = vrot.slane %v4497_v31, %v121_v30  ;;  %v126_v35 = vrot.slane %v4497_v31, %v125_v33  ;;  %v133_v41 = vsub.s32 3, %v4494_v29 }
  0x90   :  { %2244 = vmatprep.subr.bf16.mxu0 %v3808_v42 }
  0x91   :  { %3663 = vmatmul.mubr.msk.bf16.vlgmr.msra.gmra.mrb[12].mxu1 %vm208_vm1, %v4473_v10  ;;  %v3830_v10 = vld [vmem:[#allocation6 + $0x19c] ss:$20 sps:$4 sm:$0xff]  }
  0x92   :  { %2395 = vmatpush1.bf16.msra.mxu1 %v3768_v39 }
  0x93   :  { %2396 = vmatprep.subr.bf16.mxu1 %v3776_v40  ;;  %2245 = vmatpush1.bf16.msra.mxu0 %v3813_v45 }
  0x94   :  { %2246 = vmatprep.subr.bf16.mxu0 %v3814_v46  ;;  %v3862_v46 = vld [vmem:[#allocation6 + $0x280] ss:$20 sps:$4 sm:$0xff]  }
  0x96   :  { %2397 = vmatpush1.bf16.msra.mxu1 %v3774_v43 }
  0x97   :  { %2398 = vmatprep.subr.bf16.mxu1 %v3782_v44  ;;  %2247 = vmatpush1.bf16.msra.mxu0 %v3819_v49 }
  0x98   :  { %2248 = vmatprep.subr.bf16.mxu0 %v3820_v50  ;;  %v3870_v50 = vld [vmem:[#allocation6 + $0x2ac] ss:$20 sps:$4 sm:$0xff]  }
  0x9a   :  { %2399 = vmatpush1.bf16.msra.mxu1 %v3780_v47  ;;  %v3865_v47 = vld [vmem:[#allocation6 + $0x288] ss:$20 sps:$4 sm:$0xff]  }
  0x9b   :  { %2400 = vmatprep.subr.bf16.mxu1 %v3788_v48  ;;  %2249 = vmatpush1.bf16.msra.mxu0 %v3825_v53  ;;  %v134_v48 = vrot.slane %v4497_v31, %v133_v41 }
  0x9c   :  { %2250 = vmatprep.subr.bf16.mxu0 %v3826_v54  ;;  %v3868_v54 = vld [vmem:[#allocation6 + $0x2a8] ss:$20 sps:$4 sm:$0xff]  }
  0x9e   :  { %2401 = vmatpush1.bf16.msra.mxu1 %v3786_v51  ;;  %v3873_v51 = vld [vmem:[#allocation6 + $0x2b4] ss:$20 sps:$4 sm:$0xff]  }
  0x9f   :  { %2402 = vmatprep.subr.bf16.mxu1 %v3794_v52  ;;  %2251 = vmatpush1.bf16.msra.mxu0 %v3831_v57 }
  0xa0   :  { %2252 = vmatprep.subr.bf16.mxu0 %v3832_v58  ;;  %v3876_v58 = vld [vmem:[#allocation6 + $0x2d4] ss:$20 sps:$4 sm:$0xff]  }
  0xa2   :  { %2403 = vmatpush1.bf16.msra.mxu1 %v3792_v55  ;;  %v3871_v55 = vld [vmem:[#allocation6 + $0x2b0] ss:$20 sps:$4 sm:$0xff]  }
  0xa3   :  { %2404 = vmatprep.subr.bf16.mxu1 %v3800_v56  ;;  %2253 = vmatpush1.bf16.msra.mxu0 %v3837_v61 }
  0xa4   :  { %2254 = vmatprep.subr.bf16.mxu0 %v3838_v62  ;;  %v3874_v62 = vld [vmem:[#allocation6 + $0x2d0] ss:$20 sps:$4 sm:$0xff]  }
  0xa6   :  { %2405 = vmatpush1.bf16.msra.mxu1 %v3798_v59  ;;  %v3879_v59 = vld [vmem:[#allocation6 + $0x2dc] ss:$20 sps:$4 sm:$0xff]  }
  0xa7   :  { %2406 = vmatprep.subr.bf16.mxu1 %v3806_v60  ;;  %2255 = vmatpush1.bf16.msra.mxu0 %v3843_v2  ;;  %v3882_v2 = vld [vmem:[#allocation6 + $0x2fc] ss:$20 sps:$4 sm:$0xff]  }
  0xa8   :  { %2256 = vmatprep.subr.bf16.mxu0 %v3844_v3  ;;  %v3885_v3 = vld [vmem:[#allocation6 + $0x304] ss:$20 sps:$4 sm:$0xff]  }
  0xaa   :  { %2407 = vmatpush1.bf16.msra.mxu1 %v3804_v63  ;;  %v3877_v63 = vld [vmem:[#allocation6 + $0x2d8] ss:$20 sps:$4 sm:$0xff]  }
  0xab   :  { %2408 = vmatprep.subr.bf16.mxu1 %v3812_v1  ;;  %2257 = vmatpush1.bf16.msra.mxu0 %v3849_v6  ;;  %v3880_v6 = vld [vmem:[#allocation6 + $0x2f8] ss:$20 sps:$4 sm:$0xff]  }
  0xac   :  { %2258 = vmatprep.subr.bf16.mxu0 %v3850_v18  ;;  %v3900_v18 = vld [vmem:[#allocation6 + $0x374] ss:$20 sps:$4 sm:$0xff]  }
  0xae   :  { %2409 = vmatpush1.bf16.msra.mxu1 %v3810_v4 }
  0xaf   :  { %2410 = vmatprep.subr.bf16.mxu1 %v3818_v5  ;;  %2259 = vmatpush1.bf16.msra.mxu0 %v3855_v21  ;;  %v3901_v21 = vld [vmem:[#allocation6 + $0x378] ss:$20 sps:$4 sm:$0xff]  }
  0xb0   :  { %2260 = vmatprep.subr.bf16.mxu0 %v3856_v22 }
  0xb2   :  { %2411 = vmatpush1.bf16.msra.mxu1 %v3816_v7  ;;  %v3883_v7 = vld [vmem:[#allocation6 + $0x300] ss:$20 sps:$4 sm:$0xff]  }
  0xb3   :  { %2412 = vmatprep.subr.bf16.mxu1 %v3824_v8  ;;  %2261 = vmatpush1.bf16.msra.mxu0 %v3861_v25 }
  0xb4   :  { %2271 = vmatprep.subr.bf16.mxu0 %v3864_v26 }
  0xb6   :  { %2413 = vmatpush1.bf16.msra.mxu1 %v3822_v9  ;;  %v3888_v9 = vld [vmem:[#allocation6 + $0x324] ss:$20 sps:$4 sm:$0xff]  }
  0xb7   :  { %2414 = vmatprep.subr.bf16.mxu1 %v3830_v10  ;;  %v3891_v10 = vld [vmem:[#allocation6 + $0x32c] ss:$20 sps:$4 sm:$0xff]  }
  0xba   :  { %2415 = vmatpush1.bf16.msra.mxu1 %v3828_v11 }
  0xbb   :  { %2416 = vmatprep.subr.bf16.mxu1 %v3836_v12  ;;  %v3886_v12 = vld [vmem:[#allocation6 + $0x320] ss:$20 sps:$4 sm:$0xff]  }
  0xbe   :  { %2417 = vmatpush1.bf16.msra.mxu1 %v3834_v13  ;;  %v3889_v13 = vld [vmem:[#allocation6 + $0x328] ss:$20 sps:$4 sm:$0xff]  }
  0xbf   :  { %2418 = vmatprep.subr.bf16.mxu1 %v3842_v14  ;;  %v3894_v14 = vld [vmem:[#allocation6 + $0x34c] ss:$20 sps:$4 sm:$0xff]  }
  0xc2   :  { %2419 = vmatpush1.bf16.msra.mxu1 %v3840_v15  ;;  %v3897_v15 = vld [vmem:[#allocation6 + $0x354] ss:$20 sps:$4 sm:$0xff]  }
  0xc3   :  { %2420 = vmatprep.subr.bf16.mxu1 %v3848_v16  ;;  %v3892_v16 = vld [vmem:[#allocation6 + $0x348] ss:$20 sps:$4 sm:$0xff]  }
  0xc6   :  { %2421 = vmatpush1.bf16.msra.mxu1 %v3846_v17  ;;  %v3895_v17 = vld [vmem:[#allocation6 + $0x350] ss:$20 sps:$4 sm:$0xff]  }
  0xc7   :  { %2422 = vmatprep.subr.bf16.mxu1 %v3854_v19  ;;  %v3903_v19 = vld [vmem:[#allocation6 + $0x37c] ss:$20 sps:$4 sm:$0xff]  }
  0xca   :  { %2423 = vmatpush1.bf16.msra.mxu1 %v3852_v20  ;;  %v3898_v20 = vld [vmem:[#allocation6 + $0x370] ss:$20 sps:$4 sm:$0xff]  }
  0xcb   :  { %2424 = vmatprep.subr.bf16.mxu1 %v3860_v23  ;;  %v3906_v23 = vld [vmem:[#allocation6 + $0x39c] ss:$20 sps:$4 sm:$0xff]  }
  0xce   :  { %2425 = vmatpush1.bf16.msra.mxu1 %v3858_v24  ;;  %v3909_v24 = vld [vmem:[#allocation6 + $0x3a4] ss:$20 sps:$4 sm:$0xff]  }
  0xcf   :  { %2435 = vmatprep.subr.bf16.mxu1 %v3867_v27 }
 0x14c   :  { %v268_v36 = vpop.f32.mrb[0].mxu1 }
 0x14d   :  { %v269_v37 = vadd.f32 %v268_v36, %v122_v34  ;;  %v270_v38 = vpop.f32.mrb[1].mxu1  ;;  %v3907_v34 = vld [vmem:[#allocation6 + $0x3a0] ss:$20 sps:$4 sm:$0xff]  }
 0x14e   :  { %v271_v39 = vadd.f32 %v270_v38, %v126_v35  ;;  %v272_v40 = vpop.f32.mrb[2].mxu1  ;;  %v3912_v35 = vld [vmem:[#allocation6 + $0x3c4] ss:$20 sps:$4 sm:$0xff]   ;;  %v3915_v36 = vld [vmem:[#allocation6 + $0x3cc] ss:$20 sps:$4 sm:$0xff]  }
 0x14f   :  { %v397_v42 = vmax.f32 %v269_v37, 0.0  ;;  %v273_v43 = vpop.f32.mrb[3].mxu1  ;;  %v3910_v37 = vld [vmem:[#allocation6 + $0x3c0] ss:$20 sps:$4 sm:$0xff]   ;;  %v3913_v38 = vld [vmem:[#allocation6 + $0x3c8] ss:$20 sps:$4 sm:$0xff]  }
 0x150   :  { %v398_v44 = vmax.f32 %v271_v39, 0.0  ;;  %v3918_v39 = vld [vmem:[#allocation6 + $0x3ec] ss:$20 sps:$4 sm:$0xff]   ;;  %v3921_v40 = vld [vmem:[#allocation6 + $0x3f4] ss:$20 sps:$4 sm:$0xff]  }
 0x151   :  { %v4512_v49 = vpack.c.bf16 %v397_v42, %v397_v42  ;;  %v3916_v42 = vld [vmem:[#allocation6 + $0x3e8] ss:$20 sps:$4 sm:$0xff]   ;;  %v3919_v43 = vld [vmem:[#allocation6 + $0x3f0] ss:$20 sps:$4 sm:$0xff]  }
 0x152   :  { %v4507_v45 = vpack.c.bf16 %v398_v44, %v398_v44  ;;  %v3924_v44 = vld [vmem:[#allocation6 + $0x414] ss:$20 sps:$4 sm:$0xff]  }
 0x154   :  { %2262 = vmatprep.mubr.bf16.mxu0 %v4507_v45  ;;  %2426 = vmatprep.mubr.bf16.mxu1 %v4507_v45  ;;  %v4516_v52 = vpop.f32.mrb[4].mxu1 }
 0x155   :  { %2263 = vmatmul.mubr.bf16.vlgmr.msra.gmra.mrb[0].mxu0 %v4512_v49  ;;  %2427 = vmatmul.mubr.bf16.vlgmr.msra.gmra.mrb[16].mxu1 %v4512_v49  ;;  %v311_v53 = vpop.f32.mrb[5].mxu1 }
 0x156   :  { %2272 = vmatpush1.bf16.msra.mxu0 %v3862_v46  ;;  %2436 = vmatpush1.bf16.msra.mxu1 %v3865_v47  ;;  %v312_v56 = vadd.f32 %v311_v53, %v134_v48  ;;  %v313_v57 = vpop.f32.mrb[6].mxu1  ;;  %v3927_v46 = vld [vmem:[#allocation6 + $0x41c] ss:$20 sps:$4 sm:$0xff]   ;;  %v3925_v48 = vld [vmem:[#allocation6 + $0x418] ss:$20 sps:$4 sm:$0xff]  }
 0x157   :  { %2273 = vmatprep.subr.bf16.mxu0 %v3870_v50  ;;  %2437 = vmatprep.subr.bf16.mxu1 %v3873_v51  ;;  %v314_v60 = vpop.f32.mrb[7].mxu1  ;;  %v3922_v47 = vld [vmem:[#allocation6 + $0x410] ss:$20 sps:$4 sm:$0xff]   ;;  %v3928_v53 = vld [vmem:[#allocation6 + $0x438] ss:$20 sps:$4 sm:$0xff]   ;;  %v129_v57 = vsub.s32 2, %v4494_v29 }
 0x158   :  { %v400_v61 = vmax.f32 %v312_v56, 0.0  ;;  %v3930_v50 = vld [vmem:[#allocation6 + $0x43c] ss:$20 sps:$4 sm:$0xff]   ;;  %v3933_v51 = vld [vmem:[#allocation6 + $0x444] ss:$20 sps:$4 sm:$0xff]  }
 0x159   :  { %v3939_v56 = vld [vmem:[#allocation6 + $0x46c] ss:$20 sps:$4 sm:$0xff]  }
 0x15a   :  { %2274 = vmatpush1.bf16.msra.mxu0 %v3868_v54  ;;  %2438 = vmatpush1.bf16.msra.mxu1 %v3871_v55  ;;  %v4520_v1 = vpack.c.bf16 %v400_v61, %v400_v61  ;;  %v3931_v54 = vld [vmem:[#allocation6 + $0x440] ss:$20 sps:$4 sm:$0xff]   ;;  %v3936_v55 = vld [vmem:[#allocation6 + $0x464] ss:$20 sps:$4 sm:$0xff]  }
 0x15b   :  { %2275 = vmatprep.subr.bf16.mxu0 %v3876_v58  ;;  %2439 = vmatprep.subr.bf16.mxu1 %v3879_v59  ;;  %v3934_v58 = vld [vmem:[#allocation6 + $0x460] ss:$20 sps:$4 sm:$0xff]   ;;  %v3937_v59 = vld [vmem:[#allocation6 + $0x468] ss:$20 sps:$4 sm:$0xff]  }
 0x15c   :  { %2303 = vmatprep.mubr.bf16.mxu0 %v4520_v1  ;;  %2467 = vmatprep.mubr.bf16.mxu1 %v4520_v1  ;;  %v4524_v4 = vpop.f32.mrb[8].mxu1  ;;  %v3942_v60 = vld [vmem:[#allocation6 + $0x48c] ss:$20 sps:$4 sm:$0xff]   ;;  %v3945_v61 = vld [vmem:[#allocation6 + $0x494] ss:$20 sps:$4 sm:$0xff]  }
 0x15d   :  { %v4526_v5 = vpop.f32.mrb[9].mxu1 }
 0x15e   :  { %2276 = vmatpush1.bf16.msra.mxu0 %v3874_v62  ;;  %2440 = vmatpush1.bf16.msra.mxu1 %v3877_v63  ;;  %v354_v8 = vpop.f32.mrb[10].mxu1  ;;  %v141_v62 = vsub.s32 5, %v4494_v29  ;;  %v130_v63 = vrot.slane %v4497_v31, %v129_v57 }
 0x15f   :  { %2277 = vmatprep.subr.bf16.mxu0 %v3882_v2  ;;  %2441 = vmatprep.subr.bf16.mxu1 %v3885_v3  ;;  %v355_v11 = vpop.f32.mrb[11].mxu1  ;;  %v3940_v2 = vld [vmem:[#allocation6 + $0x488] ss:$20 sps:$4 sm:$0xff]   ;;  %v3943_v3 = vld [vmem:[#allocation6 + $0x490] ss:$20 sps:$4 sm:$0xff]  }
 0x160   :  { %v142_v8 = vrot.slane %v4497_v31, %v141_v62  ;;  %v3949_v11 = vld [vmem:[#allocation6 + $0x4b8] ss:$20 sps:$4 sm:$0xff]  }
 0x161   :  { %v4008_v62 = vld [vmem:[#allocation6 + $0x644] ss:$20 sps:$4 sm:$0xff]  }
 0x162   :  { %2278 = vmatpush1.bf16.msra.mxu0 %v3880_v6  ;;  %2442 = vmatpush1.bf16.msra.mxu1 %v3883_v7  ;;  %v3948_v6 = vld [vmem:[#allocation6 + $0x4b4] ss:$20 sps:$4 sm:$0xff]   ;;  %v3951_v7 = vld [vmem:[#allocation6 + $0x4bc] ss:$20 sps:$4 sm:$0xff]  }
 0x163   :  { %2279 = vmatprep.subr.bf16.mxu0 %v3888_v9  ;;  %2443 = vmatprep.subr.bf16.mxu1 %v3891_v10  ;;  %v310_v9 = vadd.f32 %v4516_v52, %v130_v63  ;;  %v3946_v10 = vld [vmem:[#allocation6 + $0x4b0] ss:$20 sps:$4 sm:$0xff]   ;;  %v4011_v63 = vld [vmem:[#allocation6 + $0x64c] ss:$20 sps:$4 sm:$0xff]  }
 0x164   :  { %v4528_v22 = vpop.f32.mrb[12].mxu1 }
 0x165   :  { %v3664_v25 = vpop.f32.mrb[13].mxu1 }
 0x166   :  { %2280 = vmatpush1.bf16.msra.mxu0 %v3886_v12  ;;  %2444 = vmatpush1.bf16.msra.mxu1 %v3889_v13  ;;  %v394_v26 = vpop.f32.mrb[14].mxu1  ;;  %v3954_v12 = vld [vmem:[#allocation6 + $0x4dc] ss:$20 sps:$4 sm:$0xff]   ;;  %v3957_v13 = vld [vmem:[#allocation6 + $0x4e4] ss:$20 sps:$4 sm:$0xff]  }
 0x167   :  { %2281 = vmatprep.subr.bf16.mxu0 %v3894_v14  ;;  %2445 = vmatprep.subr.bf16.mxu1 %v3897_v15  ;;  %v3665_v27 = vpop.f32.mrb[15].mxu1  ;;  %v353_v14 = vadd.f32 %v4526_v5, %v142_v8  ;;  %v399_v15 = vmax.f32 %v310_v9, 0.0  ;;  %v3969_v5 = vld [vmem:[#allocation6 + $0x534] ss:$20 sps:$4 sm:$0xff]   ;;  %v4015_v9 = vld [vmem:[#allocation6 + $0x670] ss:$20 sps:$4 sm:$0xff]  }
 0x168   :  { %v3964_v26 = vld [vmem:[#allocation6 + $0x528] ss:$20 sps:$4 sm:$0xff]   ;;  %v3967_v27 = vld [vmem:[#allocation6 + $0x530] ss:$20 sps:$4 sm:$0xff]  }
 0x169   :  { %v402_v52 = vmax.f32 %v353_v14, 0.0  ;;  %v4012_v8 = vld [vmem:[#allocation6 + $0x668] ss:$20 sps:$4 sm:$0xff]  }
 0x16a   :  { %2282 = vmatpush1.bf16.msra.mxu0 %v3892_v16  ;;  %2446 = vmatpush1.bf16.msra.mxu1 %v3895_v17  ;;  %v3952_v16 = vld [vmem:[#allocation6 + $0x4d8] ss:$20 sps:$4 sm:$0xff]   ;;  %v3955_v17 = vld [vmem:[#allocation6 + $0x4e0] ss:$20 sps:$4 sm:$0xff]   ;;  %v4026_v14 = vld [vmem:[#allocation6 + $0x6bc] ss:$20 sps:$4 sm:$0xff]  }
 0x16b   :  { %2283 = vmatprep.subr.bf16.mxu0 %v3900_v18  ;;  %2447 = vmatprep.subr.bf16.mxu1 %v3903_v19  ;;  %v3960_v18 = vld [vmem:[#allocation6 + $0x504] ss:$20 sps:$4 sm:$0xff]   ;;  %v3963_v19 = vld [vmem:[#allocation6 + $0x50c] ss:$20 sps:$4 sm:$0xff]   ;;  %v4540_v25 = vpack.c.bf16 %v402_v52, %v402_v52  ;;  %v137_v52 = vsub.s32 4, %v4494_v29 }
 0x16e   :  { %2284 = vmatpush1.bf16.msra.mxu0 %v3898_v20  ;;  %2448 = vmatpush1.bf16.msra.mxu1 %v3901_v21  ;;  %v4538_v20 = vpack.c.bf16 %v399_v15, %v399_v15  ;;  %v3958_v21 = vld [vmem:[#allocation6 + $0x500] ss:$20 sps:$4 sm:$0xff]   ;;  %v4029_v15 = vld [vmem:[#allocation6 + $0x6c4] ss:$20 sps:$4 sm:$0xff]  }
 0x16f   :  { %2285 = vmatprep.subr.bf16.mxu0 %v3906_v23  ;;  %2449 = vmatprep.subr.bf16.mxu1 %v3909_v24  ;;  %v3961_v23 = vld [vmem:[#allocation6 + $0x508] ss:$20 sps:$4 sm:$0xff]   ;;  %v3966_v24 = vld [vmem:[#allocation6 + $0x52c] ss:$20 sps:$4 sm:$0xff]  }
 0x172   :  { %2286 = vmatpush1.bf16.msra.mxu0 %v3904_v28  ;;  %2450 = vmatpush1.bf16.msra.mxu1 %v3907_v34  ;;  %v3972_v28 = vld [vmem:[#allocation6 + $0x554] ss:$20 sps:$4 sm:$0xff]   ;;  %v3975_v34 = vld [vmem:[#allocation6 + $0x55c] ss:$20 sps:$4 sm:$0xff]  }
 0x173   :  { %2287 = vmatprep.subr.bf16.mxu0 %v3912_v35  ;;  %2451 = vmatprep.subr.bf16.mxu1 %v3915_v36  ;;  %v3970_v35 = vld [vmem:[#allocation6 + $0x550] ss:$20 sps:$4 sm:$0xff]   ;;  %v3973_v36 = vld [vmem:[#allocation6 + $0x558] ss:$20 sps:$4 sm:$0xff]  }
 0x176   :  { %2288 = vmatpush1.bf16.msra.mxu0 %v3910_v37  ;;  %2452 = vmatpush1.bf16.msra.mxu1 %v3913_v38  ;;  %v3978_v37 = vld [vmem:[#allocation6 + $0x57c] ss:$20 sps:$4 sm:$0xff]   ;;  %v3981_v38 = vld [vmem:[#allocation6 + $0x584] ss:$20 sps:$4 sm:$0xff]  }
 0x177   :  { %2289 = vmatprep.subr.bf16.mxu0 %v3918_v39  ;;  %2453 = vmatprep.subr.bf16.mxu1 %v3921_v40  ;;  %v3976_v39 = vld [vmem:[#allocation6 + $0x578] ss:$20 sps:$4 sm:$0xff]   ;;  %v3979_v40 = vld [vmem:[#allocation6 + $0x580] ss:$20 sps:$4 sm:$0xff]  }
 0x17a   :  { %2290 = vmatpush1.bf16.msra.mxu0 %v3916_v42  ;;  %2454 = vmatpush1.bf16.msra.mxu1 %v3919_v43  ;;  %v3984_v42 = vld [vmem:[#allocation6 + $0x5a4] ss:$20 sps:$4 sm:$0xff]   ;;  %v3987_v43 = vld [vmem:[#allocation6 + $0x5ac] ss:$20 sps:$4 sm:$0xff]  }
 0x17b   :  { %2291 = vmatprep.subr.bf16.mxu0 %v3924_v44  ;;  %2455 = vmatprep.subr.bf16.mxu1 %v3927_v46  ;;  %v3982_v44 = vld [vmem:[#allocation6 + $0x5a0] ss:$20 sps:$4 sm:$0xff]   ;;  %v3985_v46 = vld [vmem:[#allocation6 + $0x5a8] ss:$20 sps:$4 sm:$0xff]  }
 0x17e   :  { %2292 = vmatpush1.bf16.msra.mxu0 %v3922_v47  ;;  %2456 = vmatpush1.bf16.msra.mxu1 %v3925_v48  ;;  %v3990_v47 = vld [vmem:[#allocation6 + $0x5cc] ss:$20 sps:$4 sm:$0xff]   ;;  %v3993_v48 = vld [vmem:[#allocation6 + $0x5d4] ss:$20 sps:$4 sm:$0xff]  }
 0x17f   :  { %2293 = vmatprep.subr.bf16.mxu0 %v3930_v50  ;;  %2457 = vmatprep.subr.bf16.mxu1 %v3933_v51  ;;  %v3988_v50 = vld [vmem:[#allocation6 + $0x5c8] ss:$20 sps:$4 sm:$0xff]   ;;  %v3991_v51 = vld [vmem:[#allocation6 + $0x5d0] ss:$20 sps:$4 sm:$0xff]  }
 0x182   :  { %2294 = vmatpush1.bf16.msra.mxu0 %v3928_v53  ;;  %2458 = vmatpush1.bf16.msra.mxu1 %v3931_v54  ;;  %v3996_v53 = vld [vmem:[#allocation6 + $0x5f4] ss:$20 sps:$4 sm:$0xff]   ;;  %v3999_v54 = vld [vmem:[#allocation6 + $0x5fc] ss:$20 sps:$4 sm:$0xff]  }
 0x183   :  { %2295 = vmatprep.subr.bf16.mxu0 %v3936_v55  ;;  %2459 = vmatprep.subr.bf16.mxu1 %v3939_v56  ;;  %v3994_v55 = vld [vmem:[#allocation6 + $0x5f0] ss:$20 sps:$4 sm:$0xff]   ;;  %v3997_v56 = vld [vmem:[#allocation6 + $0x5f8] ss:$20 sps:$4 sm:$0xff]  }
 0x186   :  { %2296 = vmatpush1.bf16.msra.mxu0 %v3934_v58  ;;  %2460 = vmatpush1.bf16.msra.mxu1 %v3937_v59  ;;  %v4002_v58 = vld [vmem:[#allocation6 + $0x61c] ss:$20 sps:$4 sm:$0xff]   ;;  %v4005_v59 = vld [vmem:[#allocation6 + $0x624] ss:$20 sps:$4 sm:$0xff]  }
 0x187   :  { %2297 = vmatprep.subr.bf16.mxu0 %v3942_v60  ;;  %2461 = vmatprep.subr.bf16.mxu1 %v3945_v61  ;;  %v4000_v60 = vld [vmem:[#allocation6 + $0x618] ss:$20 sps:$4 sm:$0xff]   ;;  %v4003_v61 = vld [vmem:[#allocation6 + $0x620] ss:$20 sps:$4 sm:$0xff]  }
 0x18a   :  { %2298 = vmatpush1.bf16.msra.mxu0 %v3940_v2  ;;  %2462 = vmatpush1.bf16.msra.mxu1 %v3943_v3  ;;  %v4006_v2 = vld [vmem:[#allocation6 + $0x640] ss:$20 sps:$4 sm:$0xff]   ;;  %v4009_v3 = vld [vmem:[#allocation6 + $0x648] ss:$20 sps:$4 sm:$0xff]  }
 0x18b   :  { %2299 = vmatprep.subr.bf16.mxu0 %v3948_v6  ;;  %2463 = vmatprep.subr.bf16.mxu1 %v3951_v7  ;;  %v4014_v6 = vld [vmem:[#allocation6 + $0x66c] ss:$20 sps:$4 sm:$0xff]   ;;  %v4017_v7 = vld [vmem:[#allocation6 + $0x674] ss:$20 sps:$4 sm:$0xff]  }
 0x18e   :  { %2300 = vmatpush1.bf16.msra.mxu0 %v3946_v10  ;;  %2464 = vmatpush1.bf16.msra.mxu1 %v3949_v11  ;;  %v4020_v10 = vld [vmem:[#allocation6 + $0x694] ss:$20 sps:$4 sm:$0xff]   ;;  %v4023_v11 = vld [vmem:[#allocation6 + $0x69c] ss:$20 sps:$4 sm:$0xff]  }
 0x18f   :  { %2301 = vmatprep.subr.bf16.mxu0 %v3954_v12  ;;  %2465 = vmatprep.subr.bf16.mxu1 %v3957_v13  ;;  %v4018_v12 = vld [vmem:[#allocation6 + $0x690] ss:$20 sps:$4 sm:$0xff]   ;;  %v4021_v13 = vld [vmem:[#allocation6 + $0x698] ss:$20 sps:$4 sm:$0xff]  }
 0x192   :  { %2302 = vmatpush1.bf16.msra.mxu0 %v3952_v16  ;;  %2466 = vmatpush1.bf16.msra.mxu1 %v3955_v17  ;;  %v4024_v16 = vld [vmem:[#allocation6 + $0x6b8] ss:$20 sps:$4 sm:$0xff]   ;;  %v4027_v17 = vld [vmem:[#allocation6 + $0x6c0] ss:$20 sps:$4 sm:$0xff]  }
 0x193   :  { %2312 = vmatprep.subr.bf16.mxu0 %v3960_v18  ;;  %2476 = vmatprep.subr.bf16.mxu1 %v3963_v19  ;;  %v4032_v18 = vld [vmem:[#allocation6 + $0x6e4] ss:$20 sps:$4 sm:$0xff]   ;;  %v4035_v19 = vld [vmem:[#allocation6 + $0x6ec] ss:$20 sps:$4 sm:$0xff]  }
 0x195   :  { %2304 = vmatmul.mubr.bf16.vlgmr.msra.gmra.mrb[0].mxu0 %v4538_v20  ;;  %2468 = vmatmul.mubr.bf16.vlgmr.msra.gmra.mrb[16].mxu1 %v4538_v20 }
 0x196   :  { %2313 = vmatpush1.bf16.msra.mxu0 %v3958_v21  ;;  %2477 = vmatpush1.bf16.msra.mxu1 %v3961_v23  ;;  %v4030_v21 = vld [vmem:[#allocation6 + $0x6e0] ss:$20 sps:$4 sm:$0xff]   ;;  %v4033_v23 = vld [vmem:[#allocation6 + $0x6e8] ss:$20 sps:$4 sm:$0xff]  }
 0x197   :  { %2314 = vmatprep.subr.bf16.mxu0 %v3966_v24  ;;  %2478 = vmatprep.subr.bf16.mxu1 %v3969_v5  ;;  %v4038_v24 = vld [vmem:[#allocation6 + $0x70c] ss:$20 sps:$4 sm:$0xff]   ;;  %v4041_v5 = vld [vmem:[#allocation6 + $0x714] ss:$20 sps:$4 sm:$0xff]  }
 0x198   :  { %2344 = vmatprep.mubr.bf16.mxu0 %v4540_v25  ;;  %2508 = vmatprep.mubr.bf16.mxu1 %v4540_v25 }
 0x19a   :  { %2315 = vmatpush1.bf16.msra.mxu0 %v3964_v26  ;;  %2479 = vmatpush1.bf16.msra.mxu1 %v3967_v27  ;;  %v138_v26 = vrot.slane %v4497_v31, %v137_v52  ;;  %v4036_v27 = vld [vmem:[#allocation6 + $0x708] ss:$20 sps:$4 sm:$0xff]  }
 0x19b   :  { %2316 = vmatprep.subr.bf16.mxu0 %v3972_v28  ;;  %2480 = vmatprep.subr.bf16.mxu1 %v3975_v34  ;;  %v4039_v28 = vld [vmem:[#allocation6 + $0x710] ss:$20 sps:$4 sm:$0xff]   ;;  %v4044_v34 = vld [vmem:[#allocation6 + $0x734] ss:$20 sps:$4 sm:$0xff]  }
 0x19e   :  { %2317 = vmatpush1.bf16.msra.mxu0 %v3970_v35  ;;  %2481 = vmatpush1.bf16.msra.mxu1 %v3973_v36  ;;  %v4047_v35 = vld [vmem:[#allocation6 + $0x73c] ss:$20 sps:$4 sm:$0xff]   ;;  %v351_v36 = vadd.f32 %v4524_v4, %v138_v26  ;;  %v4054_v4 = vld [vmem:[#allocation6 + $0x780] ss:$20 sps:$4 sm:$0xff]  }
 0x19f   :  { %2318 = vmatprep.subr.bf16.mxu0 %v3978_v37  ;;  %2482 = vmatprep.subr.bf16.mxu1 %v3981_v38  ;;  %v4042_v37 = vld [vmem:[#allocation6 + $0x730] ss:$20 sps:$4 sm:$0xff]   ;;  %v4045_v38 = vld [vmem:[#allocation6 + $0x738] ss:$20 sps:$4 sm:$0xff]  }
 0x1a0   :  { %v4103_v26 = vld [vmem:[#allocation6 + $0x3d0] ss:$20 sps:$4 sm:$0xff]  }
 0x1a2   :  { %2319 = vmatpush1.bf16.msra.mxu0 %v3976_v39  ;;  %2483 = vmatpush1.bf16.msra.mxu1 %v3979_v40  ;;  %v4050_v39 = vld [vmem:[#allocation6 + $0x75c] ss:$20 sps:$4 sm:$0xff]   ;;  %v4053_v40 = vld [vmem:[#allocation6 + $0x764] ss:$20 sps:$4 sm:$0xff]  }
 0x1a3   :  { %2320 = vmatprep.subr.bf16.mxu0 %v3984_v42  ;;  %2484 = vmatprep.subr.bf16.mxu1 %v3987_v43  ;;  %v401_v42 = vmax.f32 %v351_v36, 0.0  ;;  %v4048_v43 = vld [vmem:[#allocation6 + $0x758] ss:$20 sps:$4 sm:$0xff]  }
 0x1a4   :  { %v4108_v36 = vld [vmem:[#allocation6 + $0x38] ss:$20 sps:$4 sm:$0xff]  }
 0x1a6   :  { %2321 = vmatpush1.bf16.msra.mxu0 %v3982_v44  ;;  %2485 = vmatpush1.bf16.msra.mxu1 %v3985_v46  ;;  %v4051_v44 = vld [vmem:[#allocation6 + $0x760] ss:$20 sps:$4 sm:$0xff]   ;;  %v4056_v46 = vld [vmem:[#allocation6 + $0x784] ss:$20 sps:$4 sm:$0xff]  }
 0x1a7   :  { %2322 = vmatprep.subr.bf16.mxu0 %v3990_v47  ;;  %2486 = vmatprep.subr.bf16.mxu1 %v3993_v48  ;;  %v4059_v47 = vld [vmem:[#allocation6 + $0x78c] ss:$20 sps:$4 sm:$0xff]   ;;  %v4551_v48 = vpack.c.bf16 %v401_v42, %v401_v42 }
 0x1a8   :  { %v4113_v42 = vld [vmem:[#allocation6 + $0x2e0] ss:$20 sps:$4 sm:$0xff]  }
 0x1aa   :  { %2323 = vmatpush1.bf16.msra.mxu0 %v3988_v50  ;;  %2487 = vmatpush1.bf16.msra.mxu1 %v3991_v51  ;;  %v4057_v50 = vld [vmem:[#allocation6 + $0x788] ss:$20 sps:$4 sm:$0xff]   ;;  %v4062_v51 = vld [vmem:[#allocation6 + $0x7ac] ss:$20 sps:$4 sm:$0xff]  }
 0x1ab   :  { %2324 = vmatprep.subr.bf16.mxu0 %v3996_v53  ;;  %2488 = vmatprep.subr.bf16.mxu1 %v3999_v54  ;;  %v4065_v53 = vld [vmem:[#allocation6 + $0x7b4] ss:$20 sps:$4 sm:$0xff]  }
 0x1ac   :  { %v4060_v54 = vld [vmem:[#allocation6 + $0x7a8] ss:$20 sps:$4 sm:$0xff]  }
 0x1ae   :  { %2325 = vmatpush1.bf16.msra.mxu0 %v3994_v55  ;;  %2489 = vmatpush1.bf16.msra.mxu1 %v3997_v56  ;;  %v4063_v55 = vld [vmem:[#allocation6 + $0x7b0] ss:$20 sps:$4 sm:$0xff]   ;;  %v4068_v56 = vld [vmem:[#allocation6 + $0x7d4] ss:$20 sps:$4 sm:$0xff]  }
 0x1af   :  { %2326 = vmatprep.subr.bf16.mxu0 %v4002_v58  ;;  %2490 = vmatprep.subr.bf16.mxu1 %v4005_v59  ;;  %v4071_v58 = vld [vmem:[#allocation6 + $0x7dc] ss:$20 sps:$4 sm:$0xff]  }
 0x1b0   :  { %v4066_v59 = vld [vmem:[#allocation6 + $0x7d0] ss:$20 sps:$4 sm:$0xff]  }
 0x1b2   :  { %2327 = vmatpush1.bf16.msra.mxu0 %v4000_v60  ;;  %2491 = vmatpush1.bf16.msra.mxu1 %v4003_v61  ;;  %v4069_v60 = vld [vmem:[#allocation6 + $0x7d8] ss:$20 sps:$4 sm:$0xff]   ;;  %v4074_v61 = vld [vmem:[#allocation6 + $0x7fc] ss:$20 sps:$4 sm:$0xff]  }
 0x1b3   :  { %2328 = vmatprep.subr.bf16.mxu0 %v4008_v62  ;;  %2492 = vmatprep.subr.bf16.mxu1 %v4011_v63  ;;  %v4077_v62 = vld [vmem:[#allocation6 + $0x804] ss:$20 sps:$4 sm:$0xff]  }
 0x1b4   :  { %v4072_v63 = vld [vmem:[#allocation6 + $0x7f8] ss:$20 sps:$4 sm:$0xff]  }
 0x1b6   :  { %2329 = vmatpush1.bf16.msra.mxu0 %v4006_v2  ;;  %2493 = vmatpush1.bf16.msra.mxu1 %v4009_v3  ;;  %v4075_v2 = vld [vmem:[#allocation6 + $0x800] ss:$20 sps:$4 sm:$0xff]   ;;  %v4080_v3 = vld [vmem:[#allocation6 + $0x824] ss:$20 sps:$4 sm:$0xff]  }
 0x1b7   :  { %2330 = vmatprep.subr.bf16.mxu0 %v4014_v6  ;;  %2494 = vmatprep.subr.bf16.mxu1 %v4017_v7  ;;  %v4083_v6 = vld [vmem:[#allocation6 + $0x82c] ss:$20 sps:$4 sm:$0xff]   ;;  %v145_v7 = vsub.s32 6, %v4494_v29 }
 0x1ba   :  { %2331 = vmatpush1.bf16.msra.mxu0 %v4012_v8  ;;  %2495 = vmatpush1.bf16.msra.mxu1 %v4015_v9  ;;  %v4081_v8 = vld [vmem:[#allocation6 + $0x828] ss:$20 sps:$4 sm:$0xff]   ;;  %v4086_v9 = vld [vmem:[#allocation6 + $0x84c] ss:$20 sps:$4 sm:$0xff]  }
 0x1bb   :  { %2332 = vmatprep.subr.bf16.mxu0 %v4020_v10  ;;  %2496 = vmatprep.subr.bf16.mxu1 %v4023_v11  ;;  %v4089_v10 = vld [vmem:[#allocation6 + $0x854] ss:$20 sps:$4 sm:$0xff]   ;;  %v146_v11 = vrot.slane %v4497_v31, %v145_v7  ;;  %v4096_v31 = vld [vmem:[#allocation6 + $0x898] ss:$20 sps:$4 sm:$0xff]   ;;  %v4136_v7 = vld [vmem:[#allocation6 + $0x790] ss:$20 sps:$4 sm:$0xff]  }
 0x1be   :  { %2333 = vmatpush1.bf16.msra.mxu0 %v4018_v12  ;;  %2497 = vmatpush1.bf16.msra.mxu1 %v4021_v13  ;;  %v4084_v12 = vld [vmem:[#allocation6 + $0x848] ss:$20 sps:$4 sm:$0xff]   ;;  %v4087_v13 = vld [vmem:[#allocation6 + $0x850] ss:$20 sps:$4 sm:$0xff]  }
 0x1bf   :  { %2334 = vmatprep.subr.bf16.mxu0 %v4026_v14  ;;  %2498 = vmatprep.subr.bf16.mxu1 %v4029_v15  ;;  %v4092_v14 = vld [vmem:[#allocation6 + $0x874] ss:$20 sps:$4 sm:$0xff]   ;;  %v4095_v15 = vld [vmem:[#allocation6 + $0x87c] ss:$20 sps:$4 sm:$0xff]  }
 0x1c2   :  { %2335 = vmatpush1.bf16.msra.mxu0 %v4024_v16  ;;  %2499 = vmatpush1.bf16.msra.mxu1 %v4027_v17  ;;  %v392_v16 = vadd.f32 %v4528_v22, %v146_v11  ;;  %v4090_v17 = vld [vmem:[#allocation6 + $0x870] ss:$20 sps:$4 sm:$0xff]   ;;  %v4141_v11 = vld [vmem:[#allocation6 + $0x560] ss:$20 sps:$4 sm:$0xff]  }
 0x1c3   :  { %2336 = vmatprep.subr.bf16.mxu0 %v4032_v18  ;;  %2500 = vmatprep.subr.bf16.mxu1 %v4035_v19  ;;  %v4093_v18 = vld [vmem:[#allocation6 + $0x878] ss:$20 sps:$4 sm:$0xff]   ;;  %v4098_v19 = vld [vmem:[#allocation6 + $0x89c] ss:$20 sps:$4 sm:$0xff]  }
 0x1c4   :  { %v4104_v22 = vld [vmem:[#allocation6 + $0x10] ss:$20 sps:$4 sm:$0xff]  }
 0x1c6   :  { %2337 = vmatpush1.bf16.msra.mxu0 %v4030_v21  ;;  %2501 = vmatpush1.bf16.msra.mxu1 %v4033_v23  ;;  %v4101_v21 = vld [vmem:[#allocation6 + $0x8a4] ss:$20 sps:$4 sm:$0xff]   ;;  %v403_v23 = vmax.f32 %v392_v16, 0.0 }
 0x1c7   :  { %2338 = vmatprep.subr.bf16.mxu0 %v4038_v24  ;;  %2502 = vmatprep.subr.bf16.mxu1 %v4041_v5  ;;  %v4099_v24 = vld [vmem:[#allocation6 + $0x8a0] ss:$20 sps:$4 sm:$0xff]   ;;  %v4102_v5 = vld [vmem:[#allocation6 + $0x150] ss:$20 sps:$4 sm:$0xff]   ;;  %v4149_v16 = vld [vmem:[#allocation6 + $0x718] ss:$20 sps:$4 sm:$0xff]  }
 0x1ca   :  { %2339 = vmatpush1.bf16.msra.mxu0 %v4036_v27  ;;  %2503 = vmatpush1.bf16.msra.mxu1 %v4039_v28  ;;  %v4560_v27 = vpack.c.bf16 %v403_v23, %v403_v23  ;;  %v4105_v28 = vld [vmem:[#allocation6 + $0x290] ss:$20 sps:$4 sm:$0xff]   ;;  %v4154_v23 = vld [vmem:[#allocation6 + $0x880] ss:$20 sps:$4 sm:$0xff]  }
 0x1cb   :  { %2340 = vmatprep.subr.bf16.mxu0 %v4044_v34  ;;  %2504 = vmatprep.subr.bf16.mxu1 %v4047_v35  ;;  %v4106_v34 = vld [vmem:[#allocation6 + $0x178] ss:$20 sps:$4 sm:$0xff]  }
 0x1cc   :  { %v4107_v35 = vld [vmem:[#allocation6 + $0x3f8] ss:$20 sps:$4 sm:$0xff]  }
 0x1ce   :  { %2341 = vmatpush1.bf16.msra.mxu0 %v4042_v37  ;;  %2505 = vmatpush1.bf16.msra.mxu1 %v4045_v38  ;;  %v4109_v37 = vld [vmem:[#allocation6 + $0x2b8] ss:$20 sps:$4 sm:$0xff]   ;;  %v4110_v38 = vld [vmem:[#allocation6 + $0x1a0] ss:$20 sps:$4 sm:$0xff]  }
 0x1cf   :  { %2342 = vmatprep.subr.bf16.mxu0 %v4050_v39  ;;  %2506 = vmatprep.subr.bf16.mxu1 %v4053_v40  ;;  %v4111_v39 = vld [vmem:[#allocation6 + $0x420] ss:$20 sps:$4 sm:$0xff]  }
 0x1d0   :  { %v4112_v40 = vld [vmem:[#allocation6 + $0x60] ss:$20 sps:$4 sm:$0xff]  }
 0x1d2   :  { %2343 = vmatpush1.bf16.msra.mxu0 %v4048_v43  ;;  %2507 = vmatpush1.bf16.msra.mxu1 %v4051_v44  ;;  %v4114_v43 = vld [vmem:[#allocation6 + $0x1c8] ss:$20 sps:$4 sm:$0xff]  }
 0x1d3   :  { %2353 = vmatprep.subr.bf16.mxu0 %v4056_v46  ;;  %2517 = vmatprep.subr.bf16.mxu1 %v4059_v47  ;;  %v4115_v44 = vld [vmem:[#allocation6 + $0x448] ss:$20 sps:$4 sm:$0xff]   ;;  %v4118_v47 = vld [vmem:[#allocation6 + $0x1f0] ss:$20 sps:$4 sm:$0xff]  }
 0x1d4   :  { %v4116_v46 = vld [vmem:[#allocation6 + $0x88] ss:$20 sps:$4 sm:$0xff]  }
 0x1d5   :  { %2345 = vmatmul.mubr.bf16.vlgmr.msra.gmra.mrb[0].mxu0 %v4551_v48  ;;  %2509 = vmatmul.mubr.bf16.vlgmr.msra.gmra.mrb[16].mxu1 %v4551_v48 }
 0x1d6   :  { %2354 = vmatpush1.bf16.msra.mxu0 %v4054_v4  ;;  %2518 = vmatpush1.bf16.msra.mxu1 %v4057_v50  ;;  %v4120_v4 = vld [vmem:[#allocation6 + $0xb0] ss:$20 sps:$4 sm:$0xff]  }
 0x1d7   :  { %2355 = vmatprep.subr.bf16.mxu0 %v4062_v51  ;;  %2519 = vmatprep.subr.bf16.mxu1 %v4065_v53  ;;  %v4121_v50 = vld [vmem:[#allocation6 + $0x330] ss:$20 sps:$4 sm:$0xff]   ;;  %v4122_v51 = vld [vmem:[#allocation6 + $0x218] ss:$20 sps:$4 sm:$0xff]  }
 0x1d8   :  { %2385 = vmatprep.mubr.bf16.mxu0 %v4352_v0  ;;  %2549 = vmatprep.mubr.bf16.mxu1 %v4352_v0  ;;  %v4078_v0 = vld [vmem:[#allocation6 + $0x820] ss:$20 sps:$4 sm:$0xff]   ;;  %v4123_v53 = vld [vmem:[#allocation6 + $0x498] ss:$20 sps:$4 sm:$0xff]  }
 0x1da   :  { %2356 = vmatpush1.bf16.msra.mxu0 %v4060_v54  ;;  %2520 = vmatpush1.bf16.msra.mxu1 %v4063_v55  ;;  %v4124_v54 = vld [vmem:[#allocation6 + $0xd8] ss:$20 sps:$4 sm:$0xff]  }
 0x1db   :  { %2357 = vmatprep.subr.bf16.mxu0 %v4068_v56  ;;  %2521 = vmatprep.subr.bf16.mxu1 %v4071_v58  ;;  %v4125_v55 = vld [vmem:[#allocation6 + $0x358] ss:$20 sps:$4 sm:$0xff]   ;;  %v4126_v56 = vld [vmem:[#allocation6 + $0x240] ss:$20 sps:$4 sm:$0xff]  }
 0x1dc   :  { %v4127_v58 = vld [vmem:[#allocation6 + $0x4c0] ss:$20 sps:$4 sm:$0xff]  }
 0x1de   :  { %2358 = vmatpush1.bf16.msra.mxu0 %v4066_v59  ;;  %2522 = vmatpush1.bf16.msra.mxu1 %v4069_v60  ;;  %v4128_v59 = vld [vmem:[#allocation6 + $0x100] ss:$20 sps:$4 sm:$0xff]  }
 0x1df   :  { %2359 = vmatprep.subr.bf16.mxu0 %v4074_v61  ;;  %2523 = vmatprep.subr.bf16.mxu1 %v4077_v62  ;;  %v4129_v60 = vld [vmem:[#allocation6 + $0x380] ss:$20 sps:$4 sm:$0xff]   ;;  %v4130_v61 = vld [vmem:[#allocation6 + $0x268] ss:$20 sps:$4 sm:$0xff]  }
 0x1e0   :  { %v4131_v62 = vld [vmem:[#allocation6 + $0x4e8] ss:$20 sps:$4 sm:$0xff]  }
 0x1e2   :  { %2360 = vmatpush1.bf16.msra.mxu0 %v4072_v63  ;;  %2524 = vmatpush1.bf16.msra.mxu1 %v4075_v2  ;;  %v4132_v63 = vld [vmem:[#allocation6 + $0x128] ss:$20 sps:$4 sm:$0xff]  }
 0x1e3   :  { %2361 = vmatprep.subr.bf16.mxu0 %v4080_v3  ;;  %2525 = vmatprep.subr.bf16.mxu1 %v4083_v6  ;;  %v4133_v2 = vld [vmem:[#allocation6 + $0x3a8] ss:$20 sps:$4 sm:$0xff]   ;;  %v4134_v3 = vld [vmem:[#allocation6 + $0x650] ss:$20 sps:$4 sm:$0xff]  }
 0x1e4   :  { %v4135_v6 = vld [vmem:[#allocation6 + $0x510] ss:$20 sps:$4 sm:$0xff]  }
 0x1e6   :  { %2362 = vmatpush1.bf16.msra.mxu0 %v4078_v0  ;;  %2526 = vmatpush1.bf16.msra.mxu1 %v4081_v8  ;;  %v4137_v0 = vld [vmem:[#allocation6 + $0x678] ss:$20 sps:$4 sm:$0xff]  }
 0x1e7   :  { %2363 = vmatprep.subr.bf16.mxu0 %v4086_v9  ;;  %2527 = vmatprep.subr.bf16.mxu1 %v4089_v10  ;;  %v4138_v8 = vld [vmem:[#allocation6 + $0x538] ss:$20 sps:$4 sm:$0xff]   ;;  %v4140_v10 = vld [vmem:[#allocation6 + $0x6a0] ss:$20 sps:$4 sm:$0xff]  }
 0x1e8   :  { %v4139_v9 = vld [vmem:[#allocation6 + $0x7b8] ss:$20 sps:$4 sm:$0xff]  }
 0x1ea   :  { %2364 = vmatpush1.bf16.msra.mxu0 %v4084_v12  ;;  %2528 = vmatpush1.bf16.msra.mxu1 %v4087_v13  ;;  %v4143_v12 = vld [vmem:[#allocation6 + $0x6c8] ss:$20 sps:$4 sm:$0xff]   ;;  %v4146_v13 = vld [vmem:[#allocation6 + $0x6f0] ss:$20 sps:$4 sm:$0xff]  }
 0x1eb   :  { %2365 = vmatprep.subr.bf16.mxu0 %v4092_v14  ;;  %2529 = vmatprep.subr.bf16.mxu1 %v4095_v15  ;;  %v4147_v14 = vld [vmem:[#allocation6 + $0x5b0] ss:$20 sps:$4 sm:$0xff]  }
 0x1ec   :  { %v4148_v15 = vld [vmem:[#allocation6 + $0x830] ss:$20 sps:$4 sm:$0xff]  }
 0x1ee   :  { %2366 = vmatpush1.bf16.msra.mxu0 %v4090_v17  ;;  %2530 = vmatpush1.bf16.msra.mxu1 %v4093_v18  ;;  %v4150_v17 = vld [vmem:[#allocation6 + $0x5d8] ss:$20 sps:$4 sm:$0xff]  }
 0x1ef   :  { %2367 = vmatprep.subr.bf16.mxu0 %v4098_v19  ;;  %2531 = vmatprep.subr.bf16.mxu1 %v4101_v21  ;;  %v4151_v18 = vld [vmem:[#allocation6 + $0x858] ss:$20 sps:$4 sm:$0xff]   ;;  %v4152_v19 = vld [vmem:[#allocation6 + $0x740] ss:$20 sps:$4 sm:$0xff]  }
 0x1f0   :  { %v4153_v21 = vld [vmem:[#allocation6 + $0x600] ss:$20 sps:$4 sm:$0xff]  }
 0x1f2   :  { %2368 = vmatpush1.bf16.msra.mxu0 %v4096_v31  ;;  %2532 = vmatpush1.bf16.msra.mxu1 %v4099_v24  ;;  %v4155_v31 = vld [vmem:[#allocation6 + $0x768] ss:$20 sps:$4 sm:$0xff]  }
 0x1f3   :  { %3530 = vmatprep.subr.bf16.mxu0 %v4102_v5  ;;  %3552 = vmatprep.subr.bf16.mxu1 %v4103_v26  ;;  %v4156_v24 = vld [vmem:[#allocation6 + $0x628] ss:$20 sps:$4 sm:$0xff]  }
 0x1f4   :  { %v4157_v5 = vld [vmem:[#allocation6 + $0x8a8] ss:$20 sps:$4 sm:$0xff]  }
 0x1f5   :  { %2386 = vmatmul.mubr.bf16.vlgmr.msra.gmra.mrb[0].mxu0 %v4560_v27  ;;  %2550 = vmatmul.mubr.bf16.vlgmr.msra.gmra.mrb[16].mxu1 %v4560_v27  ;;  %v4158_v26 = vld [vmem:[#allocation9 + $0x40] sm:$0xff]  }
 0x1f6   :  { %3531 = vmatpush3.bf16.msra.mxu0 %v4104_v22  ;;  %2590 = vmatprep.mubr.bf16.mxu0 %v4507_v45  ;;  %v4117_v45 = vld [vmem:[#allocation6 + $0x308] ss:$20 sps:$4 sm:$0xff]  }
 0x1f7   :  { %3553 = vmatpush3.bf16.msra.mxu1 %v4105_v28  ;;  %2630 = vmatprep.mubr.bf16.mxu1 %v4520_v1  ;;  %v4119_v1 = vld [vmem:[#allocation6 + $0x470] ss:$20 sps:$4 sm:$0xff]  }
 0x1f8   :  { %3532 = vmatprep.subr.bf16.mxu0 %v4106_v34  ;;  %3554 = vmatprep.subr.bf16.mxu1 %v4107_v35  ;;  %v4159_v22 = vld [vmem:[#allocation9 + $0xc0] sm:$0xff]   ;;  %v4162_v35 = vld [vmem:[#allocation9 + $0x48] sm:$0xff]  }
 0x1f9   :  { %v4160_v28 = vld [vmem:[#allocation9] sm:$0xff]  }
 0x1fa   :  { %3533 = vmatpush3.bf16.msra.mxu0 %v4108_v36  ;;  %v4161_v34 = vld [vmem:[#allocation9 + $0x80] sm:$0xff]   ;;  %v4163_v36 = vld [vmem:[#allocation9 + $0xc8] sm:$0xff]  }
 0x1fb   :  { %3555 = vmatpush3.bf16.msra.mxu1 %v4109_v37  ;;  %3534 = vmatprep.subr.bf16.mxu0 %v4110_v38  ;;  %v4164_v37 = vld [vmem:[#allocation9 + $0x8] sm:$0xff]  }
 0x1fc   :  { %3556 = vmatprep.subr.bf16.mxu1 %v4111_v39  ;;  %v4165_v38 = vld [vmem:[#allocation9 + $0x88] sm:$0xff]   ;;  %v4166_v39 = vld [vmem:[#allocation9 + $0x50] sm:$0xff]  }
 0x1fe   :  { %3535 = vmatpush3.bf16.msra.mxu0 %v4112_v40  ;;  %v4167_v40 = vld [vmem:[#allocation9 + $0xd0] sm:$0xff]  }
 0x1ff   :  { %3557 = vmatpush3.bf16.msra.mxu1 %v4113_v42  ;;  %3536 = vmatprep.subr.bf16.mxu0 %v4114_v43  ;;  %v4168_v42 = vld [vmem:[#allocation9 + $0x10] sm:$0xff]  }
 0x200   :  { %3558 = vmatprep.subr.bf16.mxu1 %v4115_v44  ;;  %v4169_v43 = vld [vmem:[#allocation9 + $0x90] sm:$0xff]   ;;  %v4170_v44 = vld [vmem:[#allocation9 + $0x58] sm:$0xff]  }
 0x202   :  { %3537 = vmatpush3.bf16.msra.mxu0 %v4116_v46  ;;  %v4171_v46 = vld [vmem:[#allocation9 + $0xd8] sm:$0xff]  }
 0x203   :  { %3559 = vmatpush3.bf16.msra.mxu1 %v4117_v45  ;;  %3538 = vmatprep.subr.bf16.mxu0 %v4118_v47  ;;  %v4174_v45 = vld [vmem:[#allocation9 + $0x60] sm:$0xff]  }
 0x204   :  { %3560 = vmatprep.subr.bf16.mxu1 %v4119_v1  ;;  %v4175_v47 = vld [vmem:[#allocation9 + $0xe0] sm:$0xff]  }
 0x205   :  { %v4176_v1 = vld [vmem:[#allocation9 + $0x20] sm:$0xff]  }
 0x206   :  { %3539 = vmatpush3.bf16.msra.mxu0 %v4120_v4  ;;  %v4177_v4 = vld [vmem:[#allocation9 + $0xa0] sm:$0xff]  }
 0x207   :  { %3561 = vmatpush3.bf16.msra.mxu1 %v4121_v50  ;;  %3540 = vmatprep.subr.bf16.mxu0 %v4122_v51  ;;  %v4178_v50 = vld [vmem:[#allocation9 + $0x68] sm:$0xff]  }
 0x208   :  { %3562 = vmatprep.subr.bf16.mxu1 %v4123_v53  ;;  %v4179_v51 = vld [vmem:[#allocation9 + $0xe8] sm:$0xff]  }
 0x209   :  { %v4180_v53 = vld [vmem:[#allocation9 + $0x28] sm:$0xff]  }
 0x20a   :  { %3541 = vmatpush3.bf16.msra.mxu0 %v4124_v54  ;;  %v4181_v54 = vld [vmem:[#allocation9 + $0xa8] sm:$0xff]  }
 0x20b   :  { %3563 = vmatpush3.bf16.msra.mxu1 %v4125_v55  ;;  %3542 = vmatprep.subr.bf16.mxu0 %v4126_v56  ;;  %v4182_v55 = vld [vmem:[#allocation9 + $0x70] sm:$0xff]  }
 0x20c   :  { %3564 = vmatprep.subr.bf16.mxu1 %v4127_v58  ;;  %v4183_v56 = vld [vmem:[#allocation9 + $0xf0] sm:$0xff]  }
 0x20d   :  { %v4184_v58 = vld [vmem:[#allocation9 + $0x30] sm:$0xff]  }
 0x20e   :  { %3543 = vmatpush3.bf16.msra.mxu0 %v4128_v59  ;;  %v4185_v59 = vld [vmem:[#allocation9 + $0xb0] sm:$0xff]  }
 0x20f   :  { %3565 = vmatpush3.bf16.msra.mxu1 %v4129_v60  ;;  %3544 = vmatprep.subr.bf16.mxu0 %v4130_v61  ;;  %v4186_v60 = vld [vmem:[#allocation9 + $0x78] sm:$0xff]  }
 0x210   :  { %3566 = vmatprep.subr.bf16.mxu1 %v4131_v62  ;;  %v4187_v61 = vld [vmem:[#allocation9 + $0xf8] sm:$0xff]  }
 0x211   :  { %v4188_v62 = vld [vmem:[#allocation9 + $0x38] sm:$0xff]  }
 0x212   :  { %3545 = vmatpush3.bf16.msra.mxu0 %v4132_v63  ;;  %v4189_v63 = vld [vmem:[#allocation9 + $0xb8] sm:$0xff]  }
 0x213   :  { %3567 = vmatpush3.bf16.msra.mxu1 %v4133_v2  ;;  %3574 = vmatprep.subr.bf16.mxu0 %v4134_v3  ;;  %v747_v2 = vld [vmem:[#allocation7] sm:$0x1f] }
 0x214   :  { %3666 = vmatprep.subr.bf16.mxu1 %v4353_v32  ;;  %v752_v3 = vrot.slane %v747_v2, %v121_v30 }
 0x215   :  { %2591 = vmatmul.mubr.bf16.vlgmr.msra.gmra.mrb[4].mxu0 %v4512_v49  ;;  %v4142_v49 = vld [vmem:[#allocation6 + $0x7e0] ss:$20 sps:$4 sm:$0xff]  }
 0x216   :  { %2631 = vmatmul.mubr.bf16.vlgmr.msra.gmra.mrb[20].mxu1 %v4538_v20  ;;  %3575 = vmatpush3.bf16.msra.mxu0 %v4135_v6  ;;  %v4144_v20 = vld [vmem:[#allocation6 + $0x588] ss:$20 sps:$4 sm:$0xff]   ;;  %v760_v6 = vrot.slane %v747_v2, %v129_v57 }
 0x217   :  { %2670 = vmatprep.mubr.bf16.mxu0 %v4540_v25  ;;  %3667 = vmatpush3.bf16.msra.mxu1 %v4136_v7  ;;  %v4145_v25 = vld [vmem:[#allocation6 + $0x808] ss:$20 sps:$4 sm:$0xff]   ;;  %v756_v7 = vrot.slane %v747_v2, %v125_v33 }
 0x218   :  { %3576 = vmatprep.subr.bf16.mxu0 %v4137_v0  ;;  %3668 = vmatprep.subr.bf16.mxu1 %v4353_v32  ;;  %v764_v0 = vrot.slane %v747_v2, %v133_v41 }
 0x219   :  { %3682 = vmatprep.mubr.msk.bf16.mxu1 %vm4354_vm2, %v4353_v32 }
 0x21a   :  { %3577 = vmatpush3.bf16.msra.mxu0 %v4138_v8 }
 0x21b   :  { %3669 = vmatpush3.bf16.msra.mxu1 %v4139_v9  ;;  %3578 = vmatprep.subr.bf16.mxu0 %v4140_v10 }
 0x21c   :  { %3670 = vmatprep.subr.bf16.mxu1 %v4353_v32 }
 0x21e   :  { %3579 = vmatpush3.bf16.msra.mxu0 %v4141_v11 }
 0x21f   :  { %3671 = vmatpush3.bf16.msra.mxu1 %v4142_v49  ;;  %3580 = vmatprep.subr.bf16.mxu0 %v4143_v12 }
 0x220   :  { %3672 = vmatprep.subr.bf16.mxu1 %v4353_v32 }
 0x222   :  { %3581 = vmatpush3.bf16.msra.mxu0 %v4144_v20 }
 0x223   :  { %3673 = vmatpush3.bf16.msra.mxu1 %v4145_v25  ;;  %3582 = vmatprep.subr.bf16.mxu0 %v4146_v13 }
 0x224   :  { %3674 = vmatprep.subr.bf16.mxu1 %v4353_v32 }
 0x226   :  { %3583 = vmatpush3.bf16.msra.mxu0 %v4147_v14 }
 0x227   :  { %3675 = vmatpush3.bf16.msra.mxu1 %v4148_v15  ;;  %3584 = vmatprep.subr.bf16.mxu0 %v4149_v16 }
 0x228   :  { %3676 = vmatprep.subr.bf16.mxu1 %v4353_v32 }
 0x22a   :  { %3585 = vmatpush3.bf16.msra.mxu0 %v4150_v17 }
 0x22b   :  { %3677 = vmatpush3.bf16.msra.mxu1 %v4151_v18  ;;  %3586 = vmatprep.subr.bf16.mxu0 %v4152_v19 }
 0x22c   :  { %3678 = vmatprep.subr.bf16.mxu1 %v4353_v32 }
 0x22e   :  { %3587 = vmatpush3.bf16.msra.mxu0 %v4153_v21  ;;  %v4190_v21 = vld [vmem:[#allocation9 + $0x100] sm:$0xff]  }
 0x22f   :  { %3679 = vmatpush3.bf16.msra.mxu1 %v4154_v23  ;;  %3588 = vmatprep.subr.bf16.mxu0 %v4155_v31  ;;  %v4191_v31 = vld [vmem:[#allocation9 + $0x108] sm:$0xff]  }
 0x230   :  { %3680 = vmatprep.subr.bf16.mxu1 %v4353_v32 }
 0x232   :  { %3589 = vmatpush3.bf16.msra.mxu0 %v4156_v24  ;;  %v4192_v24 = vld [vmem:[#allocation9 + $0x110] sm:$0xff]  }
 0x233   :  { %3681 = vmatpush3.bf16.msra.mxu1 %v4157_v5  ;;  %3605 = vmatprep.subr.bf16.mxu0 %v4158_v26  ;;  %v4193_v5 = vld [vmem:[#allocation9 + $0x118] sm:$0xff]   ;;  %v4194_v26 = vld [vmem:[#allocation9 + $0x120] sm:$0xff]  }
 0x234   :  { %3627 = vmatprep.subr.bf16.mxu1 %v4159_v22  ;;  %v4195_v22 = vld [vmem:[#allocation9 + $0x128] sm:$0xff]  }
 0x235   :  { %2671 = vmatmul.mubr.bf16.vlgmr.msra.gmra.mrb[8].mxu0 %v4551_v48  ;;  %v4172_v48 = vld [vmem:[#allocation9 + $0x18] sm:$0xff]  }
 0x236   :  { %3683 = vmatmul.mubr.bf16.vlgmr.msra.gmra.mrb[24].mxu1 %v4560_v27  ;;  %3606 = vmatpush3.bf16.msra.mxu0 %v4160_v28  ;;  %v4173_v27 = vld [vmem:[#allocation9 + $0x98] sm:$0xff]   ;;  %v4196_v28 = vld [vmem:[#allocation9 + $0x130] sm:$0xff]  }
 0x237   :  { %3628 = vmatpush3.bf16.msra.mxu1 %v4161_v34  ;;  %3607 = vmatprep.subr.bf16.mxu0 %v4162_v35  ;;  %v768_v35 = vrot.slane %v747_v2, %v137_v52 }
 0x238   :  { %3629 = vmatprep.subr.bf16.mxu1 %v4163_v36 }
 0x23a   :  { %3608 = vmatpush3.bf16.msra.mxu0 %v4164_v37 }
 0x23b   :  { %3630 = vmatpush3.bf16.msra.mxu1 %v4165_v38  ;;  %3609 = vmatprep.subr.bf16.mxu0 %v4166_v39 }
 0x23c   :  { %3631 = vmatprep.subr.bf16.mxu1 %v4167_v40 }
 0x23e   :  { %3610 = vmatpush3.bf16.msra.mxu0 %v4168_v42  ;;  %v4197_v42 = vld [vmem:[#allocation9 + $0x138] sm:$0xff]  }
 0x23f   :  { %3632 = vmatpush3.bf16.msra.mxu1 %v4169_v43  ;;  %3611 = vmatprep.subr.bf16.mxu0 %v4170_v44 }
 0x240   :  { %3633 = vmatprep.subr.bf16.mxu1 %v4171_v46 }
 0x242   :  { %3612 = vmatpush3.bf16.msra.mxu0 %v4172_v48 }
 0x243   :  { %3634 = vmatpush3.bf16.msra.mxu1 %v4173_v27  ;;  %3613 = vmatprep.subr.bf16.mxu0 %v4174_v45 }
 0x244   :  { %3635 = vmatprep.subr.bf16.mxu1 %v4175_v47 }
 0x246   :  { %3614 = vmatpush3.bf16.msra.mxu0 %v4176_v1 }
 0x247   :  { %3636 = vmatpush3.bf16.msra.mxu1 %v4177_v4  ;;  %3615 = vmatprep.subr.bf16.mxu0 %v4178_v50 }
 0x248   :  { %3637 = vmatprep.subr.bf16.mxu1 %v4179_v51 }
 0x24a   :  { %3616 = vmatpush3.bf16.msra.mxu0 %v4180_v53 }
 0x24b   :  { %3638 = vmatpush3.bf16.msra.mxu1 %v4181_v54  ;;  %3617 = vmatprep.subr.bf16.mxu0 %v4182_v55 }
 0x24c   :  { %3639 = vmatprep.subr.bf16.mxu1 %v4183_v56 }
 0x24e   :  { %3618 = vmatpush3.bf16.msra.mxu0 %v4184_v58 }
 0x24f   :  { %3640 = vmatpush3.bf16.msra.mxu1 %v4185_v59  ;;  %3619 = vmatprep.subr.bf16.mxu0 %v4186_v60 }
 0x250   :  { %3641 = vmatprep.subr.bf16.mxu1 %v4187_v61  ;;  %v3486_v61 = vld [vmem:[#allocation10] ss:$0 sm:$0xff] }
 0x252   :  { %3620 = vmatpush3.bf16.msra.mxu0 %v4188_v62 }
 0x253   :  { %3642 = vmatpush3.bf16.msra.mxu1 %v4189_v63  ;;  %3686 = vmatprep.subr.bf16.mxu0 %v4353_v32 }
 0x2c8   :  { %v2387_v8 = vpop.f32.mrb[0].mxu0  ;;  %v2551_v9 = vpop.f32.mrb[16].mxu1 }
 0x2c9   :  { %v3706_v10 = vadd.f32 %v2387_v8, %v752_v3  ;;  %v3708_v11 = vadd.f32 %v2551_v9, %v760_v6  ;;  %v2389_v49 = vpop.f32.mrb[1].mxu0  ;;  %v2553_v12 = vpop.f32.mrb[17].mxu1 }
 0x2ca   :  { %v3707_v20 = vadd.f32 %v2389_v49, %v756_v7  ;;  %v3709_v25 = vadd.f32 %v2553_v12, %v764_v0  ;;  %v2391_v13 = vpop.f32.mrb[2].mxu0  ;;  %v2555_v14 = vpop.f32.mrb[18].mxu1 }
 0x2cb   :  { %v2718_v30 = vmax.f32 %v3706_v10, 0.0  ;;  %v2720_v15 = vmax.f32 %v3708_v11, 0.0  ;;  %v2392_v16 = vpop.f32.mrb[3].mxu0  ;;  %v2556_v57 = vpop.f32.mrb[19].mxu1 }
 0x2cc   :  { %v2719_v17 = vmax.f32 %v3707_v20, 0.0  ;;  %v2721_v18 = vmax.f32 %v3709_v25, 0.0 }
 0x2cd   :  { %v2723_v41 = vpack.c.bf16 %v2718_v30, %v2718_v30  ;;  %v2725_v23 = vpack.c.bf16 %v2720_v15, %v2720_v15 }
 0x2ce   :  { %v2724_v33 = vpack.c.bf16 %v2719_v17, %v2719_v17  ;;  %v2726_v19 = vpack.c.bf16 %v2721_v18, %v2721_v18 }
 0x2d0   :  { %3087 = vmatprep.mubr.bf16.mxu0 %v2724_v33  ;;  %3127 = vmatprep.mubr.bf16.mxu1 %v2726_v19 }
 0x2d1   :  { %3088 = vmatmul.mubr.bf16.vlgmr.msra.gmra.mrb[12].mxu0 %v2723_v41  ;;  %3128 = vmatmul.mubr.bf16.vlgmr.msra.gmra.mrb[28].mxu1 %v2725_v23 }
 0x2d2   :  { %3687 = vmatpush3.bf16.msra.mxu0 %v4190_v21  ;;  %3702 = vmatprep.mubr.msk.bf16.mxu0 %vm4354_vm2, %v4353_v32 }
 0x2d3   :  { %3688 = vmatprep.subr.bf16.mxu0 %v4353_v32 }
 0x2d6   :  { %3689 = vmatpush3.bf16.msra.mxu0 %v4191_v31 }
 0x2d7   :  { %3690 = vmatprep.subr.bf16.mxu0 %v4353_v32 }
 0x2da   :  { %3691 = vmatpush3.bf16.msra.mxu0 %v4192_v24 }
 0x2db   :  { %3692 = vmatprep.subr.bf16.mxu0 %v4353_v32 }
 0x2de   :  { %3693 = vmatpush3.bf16.msra.mxu0 %v4193_v5 }
 0x2df   :  { %3694 = vmatprep.subr.bf16.mxu0 %v4353_v32 }
 0x2e2   :  { %3695 = vmatpush3.bf16.msra.mxu0 %v4194_v26 }
 0x2e3   :  { %3696 = vmatprep.subr.bf16.mxu0 %v4353_v32 }
 0x2e6   :  { %3697 = vmatpush3.bf16.msra.mxu0 %v4195_v22 }
 0x2e7   :  { %3698 = vmatprep.subr.bf16.mxu0 %v4353_v32 }
 0x2e8   :  { %v3546_v34 = vpop.f32.mrb[4].mxu0 }
 0x2e9   :  { %v3568_v36 = vpop.f32.mrb[20].mxu1  ;;  %v3547_v37 = vpop.f32.mrb[5].mxu0 }
 0x2ea   :  { %v3548_v38 = vadd.f32 %v3547_v37, %v3546_v34  ;;  %v3569_v39 = vpop.f32.mrb[21].mxu1  ;;  %v3549_v40 = vpop.f32.mrb[6].mxu0  ;;  %3699 = vmatpush3.bf16.msra.mxu0 %v4196_v28 }
 0x2eb   :  { %v3570_v43 = vadd.f32 %v3569_v39, %v3568_v36  ;;  %v3571_v44 = vpop.f32.mrb[22].mxu1  ;;  %v3550_v46 = vpop.f32.mrb[7].mxu0  ;;  %3700 = vmatprep.subr.bf16.mxu0 %v4353_v32 }
 0x2ec   :  { %v2593_v48 = vadd.f32 %v3548_v38, %v768_v35  ;;  %v3572_v27 = vpop.f32.mrb[23].mxu1 }
 0x2ee   :  { %v2633_v45 = vadd.f32 %v3570_v43, %v2593_v48  ;;  %3701 = vmatpush3.bf16.msra.mxu0 %v4197_v42 }
 0x308   :  { %v3590_v47 = vpop.f32.mrb[8].mxu0 }
 0x309   :  { %v2712_v1 = vpop.f32.mrb[24].mxu1  ;;  %v3591_v29 = vpop.f32.mrb[9].mxu0 }
 0x30a   :  { %v3592_v52 = vadd.f32 %v3591_v29, %v3590_v47  ;;  %v3684_v4 = vpop.f32.mrb[25].mxu1  ;;  %v3593_v50 = vpop.f32.mrb[10].mxu0 }
 0x30b   :  { %v2715_v51 = vpop.f32.mrb[26].mxu1  ;;  %v3594_v53 = vpop.f32.mrb[11].mxu0 }
 0x30c   :  { %v2673_v54 = vadd.f32 %v3592_v52, %v2633_v45  ;;  %v3685_v55 = vpop.f32.mrb[27].mxu1 }
 0x30e   :  { %v2713_v56 = vadd.f32 %v2712_v1, %v2673_v54 }
 0x310   :  { %v2722_v58 = vmax.f32 %v2713_v56, 0.0 }
 0x312   :  { %v2727_v59 = vpack.c.bf16 %v2722_v58, %v2722_v58 }
 0x314   :  { %3703 = vmatmul.mubr.bf16.vlgmr.msra.gmra.mrb[16].mxu0 %v2727_v59 }
 0x3a4   :  { %v3621_v60 = vpop.f32.mrb[12].mxu0  ;;  %v3643_v32 = vpop.f32.mrb[28].mxu1 }
 0x3a5   :  { %v3622_v62 = vpop.f32.mrb[13].mxu0  ;;  %v3644_v63 = vpop.f32.mrb[29].mxu1 }
 0x3a6   :  { %v3623_v2 = vadd.f32 %v3622_v62, %v3621_v60  ;;  %v3645_v3 = vadd.f32 %v3644_v63, %v3643_v32  ;;  %v3624_v6 = vpop.f32.mrb[14].mxu0  ;;  %v3646_v7 = vpop.f32.mrb[30].mxu1 }
 0x3a7   :  { %v3625_v0 = vpop.f32.mrb[15].mxu0  ;;  %v3647_v8 = vpop.f32.mrb[31].mxu1 }
 0x3a8   :  { %v3090_v9 = vadd.f32 %v3623_v2, %v3486_v61 }
 0x3aa   :  { %v3130_v10 = vadd.f32 %v3645_v3, %v3090_v9 }
 0x3e7   :  { %v3169_v11 = vpop.f32.mrb[16].mxu0 }
 0x3e8   :  { %v3170_v49 = vadd.f32 %v3169_v11, %v3130_v10  ;;  %v3704_v12 = vpop.f32.mrb[17].mxu0 }
 0x3e9   :  { %v3172_v20 = vpop.f32.mrb[18].mxu0 }
 0x3ea   :  { %4198 = vtanh.f32 %v3170_v49  ;;  %v3705_v25 = vpop.f32.mrb[19].mxu0 }
 0x3f4   :  { %v4199_v13 = vpop.eup %4198 }
 0x3f5   :  { %3176 = vst [vmem:[%s4611_s7] sm:$0xff] %v4199_v13 }
 0x3f6   :  { %3181 = vsyncpa [#allocation3], 1 }
 0x3f7   :  { %3182 = vsyncpa [#allocation5], 1 }
 0x3f8   :  { %3183 = vsyncpa [#allocation8], 1 }
 0x3f9   :  { %3184 = vsyncpa [#allocation11], 1 }

</bundles_post_ra>
